<compile_context>
chip_gen: v7x
topology: tpu7x:2x2x1
jax: 0.10.0
libtpu: 0.0.40
codegen_flags: <defaults>
</compile_context>

<pallas_src>
import math

import jax
import jax.numpy as jnp
from jax.experimental import pallas as pl
from jax.experimental.pallas import tpu as pltpu

D_MODEL = 32
NUM_HEADS = 4
D_K = D_MODEL // NUM_HEADS
NEG_INF = -1e9


def relation_attention_kernel(x_ref, g_ref, mb_ref, wqkv_ref, bqkv_ref,
                              wrel_ref, brel_ref, wout_ref, bout_ref,
                              e_ref, et_ref, out_x_ref, out_g_ref):
    Bt = mb_ref.shape[0]          # batch tile
    N = mb_ref.shape[1]           # nodes
    D = x_ref.shape[-1]           # d_model
    H = e_ref.shape[-1]           # heads
    dk = D // H
    inv_sqrt_dk = 1.0 / math.sqrt(dk)

    x = x_ref[...]                # (Bt*N, D)
    g = g_ref[...]                # (Bt*N*N, D)

    # Fused Q/K/V projection: one (Bt*N, D) @ (D, 3D) matmul.
    qkv = jnp.dot(x, wqkv_ref[...], preferred_element_type=jnp.float32) + bqkv_ref[...]
    q3 = qkv[:, :D].reshape(Bt, N, D)
    k3 = qkv[:, D:2 * D].reshape(Bt, N, D)
    v3 = qkv[:, 2 * D:].reshape(Bt, N, D)

    # Fused relation key/value projection: one (Bt*N^2, D) @ (D, 2D) matmul.
    rel = jnp.dot(g, wrel_ref[...], preferred_element_type=jnp.float32) + brel_ref[...]
    gk4 = rel[:, :D].reshape(Bt, N, N, D)       # relation_key_map(batched_graphs)
    gv4 = rel[:, D:].reshape(Bt, N, N, D)       # relation_value_map(batched_graphs)

    # scores[b,x,y,h] = (1/sqrt(dk)) * sum_D q[b,x,D]*(k[b,y,D]+gk[b,x,y,D])*E[D,h]
    t = q3[:, :, None, :] * (k3[:, None, :, :] + gk4)              # (Bt, N, N, D)
    scores = jnp.dot(t.reshape(Bt * N * N, D), e_ref[...],
                     preferred_element_type=jnp.float32)           # (Bt*N*N, H)
    scores = scores.reshape(Bt, N, N, H) * inv_sqrt_dk
    scores = scores + mb_ref[...]                                  # additive -1e9 mask

    # Softmax over the key/node axis y (axis=2).
    mx = jnp.max(scores, axis=2, keepdims=True)
    ex = jnp.exp(scores - mx)
    p = ex / jnp.sum(ex, axis=2, keepdims=True)
    # dropout(p) == p at inference.

    # Expand per-head probs to all dk lanes of that head: Pe[b,x,y,D] = p[b,x,y,head(D)].
    pe = jnp.dot(p.reshape(Bt * N * N, H), et_ref[...],
                 preferred_element_type=jnp.float32).reshape(Bt, N, N, D)

    # x_attn[b,x,D] = sum_y Pe[b,x,y,D] * (v[b,y,D] + gv[b,x,y,D])   (= x_v + x_graph)
    x_attn = jnp.sum(pe * (v3[:, None, :, :] + gv4), axis=2)        # (Bt, N, D)
    x_attn = x_attn.reshape(Bt * N, D)

    # Fused output / left / right projections: one (Bt*N, D) @ (D, 3D) matmul.
    out3 = jnp.dot(x_attn, wout_ref[...], preferred_element_type=jnp.float32) + bout_ref[...]
    out_x_ref[...] = out3[:, :D]                                    # linears[-1](x)

    xl3 = out3[:, D:2 * D].reshape(Bt, N, D)                        # left_linear(x)
    xr3 = out3[:, 2 * D:].reshape(Bt, N, D)                         # right_linear(x)
    # Lane-dense graph-update slab: out_g[b, x, y*D + i] = xl[b,x,i] + xr[b,y,i]
    out_g_ref[...] = jnp.concatenate(
        [xl3 + xr3[:, y:y + 1, :] for y in range(N)], axis=-1)      # (Bt, N, N*D)


def relation_attention(x, batched_graphs, mask, W_all, b_all, *, batch_tile=None):
    B, N, D = x.shape
    H = NUM_HEADS
    dk = D // H

    if batch_tile is None:
        batch_tile = min(B, 64)      # whole batch in one step at small B
    assert B % batch_tile == 0, "batch must be divisible by batch_tile"
    grid = (B // batch_tile,)

    # Wrapper-side layout plumbing (free XLA reshapes / tiny constants).
    x_flat = x.reshape(B * N, D)
    g_flat = batched_graphs.reshape(B * N * N, D)
    mask_bias = jnp.broadcast_to(
        (mask.astype(jnp.float32) * NEG_INF)[..., None], (B, N, N, H))

    W_qkv = jnp.concatenate([W_all[0], W_all[1], W_all[2]], axis=1)   # (D, 3D)
    b_qkv = jnp.concatenate([b_all[0], b_all[1], b_all[2]], axis=1)   # (1, 3D)
    W_rel = jnp.concatenate([W_all[6], W_all[7]], axis=1)             # (D, 2D)
    b_rel = jnp.concatenate([b_all[6], b_all[7]], axis=1)             # (1, 2D)
    W_out = jnp.concatenate([W_all[3], W_all[4], W_all[5]], axis=1)   # (D, 3D)
    b_out = jnp.concatenate([b_all[3], b_all[4], b_all[5]], axis=1)   # (1, 3D)

    head_ids = jnp.arange(D) // dk
    E = (head_ids[:, None] == jnp.arange(H)[None, :]).astype(jnp.float32)  # (D, H)
    ET = E.T                                                                # (H, D)

    Mt = batch_tile * N
    Gt = batch_tile * N * N
    out_shapes = (
        jax.ShapeDtypeStruct((B * N, D), jnp.float32),       # out_x (flat)
        jax.ShapeDtypeStruct((B, N, N * D), jnp.float32),    # out_g (lane-dense slab)
    )

    out_x_flat, out_g_slab = pl.pallas_call(
        relation_attention_kernel,
        out_shape=out_shapes,
        grid_spec=pltpu.PrefetchScalarGridSpec(
            num_scalar_prefetch=0,
            grid=grid,
            in_specs=[
                pl.BlockSpec((Mt, D), lambda b: (b, 0)),                    # x
                pl.BlockSpec((Gt, D), lambda b: (b, 0)),                    # batched_graphs
                pl.BlockSpec((batch_tile, N, N, H), lambda b: (b, 0, 0, 0)),  # mask bias
                pl.BlockSpec((D, 3 * D), lambda b: (0, 0)),                 # W_qkv (resident)
                pl.BlockSpec((1, 3 * D), lambda b: (0, 0)),                 # b_qkv
                pl.BlockSpec((D, 2 * D), lambda b: (0, 0)),                 # W_rel
                pl.BlockSpec((1, 2 * D), lambda b: (0, 0)),                 # b_rel
                pl.BlockSpec((D, 3 * D), lambda b: (0, 0)),                 # W_out
                pl.BlockSpec((1, 3 * D), lambda b: (0, 0)),                 # b_out
                pl.BlockSpec((D, H), lambda b: (0, 0)),                     # E
                pl.BlockSpec((H, D), lambda b: (0, 0)),                     # E^T
            ],
            out_specs=[
                pl.BlockSpec((Mt, D), lambda b: (b, 0)),
                pl.BlockSpec((batch_tile, N, N * D), lambda b: (b, 0, 0)),
            ],
        ),
        compiler_params=pltpu.CompilerParams(
            dimension_semantics=("parallel",)),
    )(x_flat, g_flat, mask_bias, W_qkv, b_qkv, W_rel, b_rel, W_out, b_out, E, ET)

    out_x = out_x_flat.reshape(B, N, D)
    out_g = out_g_slab.reshape(B, N, N, D)
    return out_x, out_g


def reference(x, g, mask, W_all, b_all):
    """Pure-JAX reference mirroring the PyTorch forward (eval mode)."""
    B, N, D = x.shape
    H, dk = NUM_HEADS, D_K
    lin = lambda v, i: v @ W_all[i] + b_all[i, 0]
    gk = lin(g.reshape(B, N * N, D), 6).reshape(B, N, N, H, dk)
    gv = lin(g.reshape(B, N * N, D), 7).reshape(B, N, N, H, dk)
    q = lin(x, 0).reshape(B, N, H, dk)
    k = lin(x, 1).reshape(B, N, H, dk)
    v = lin(x, 2).reshape(B, N, H, dk)
    sk = jnp.einsum('bxhd,byhd->bxyh', q, k)
    sg = jnp.einsum('bxhd,bxyhd->bxyh', q, gk)
    s = (sk + sg) / math.sqrt(dk)
    s = jnp.where((mask > 0.5)[..., None], NEG_INF, s)
    p = jax.nn.softmax(s, axis=2)
    xv = jnp.einsum('bxyh,byhd->bxhd', p, v)
    xg = jnp.einsum('bxyh,bxyhd->bxhd', p, gv)
    xo = (xv + xg).reshape(B, N, D)
    out1 = lin(xo, 3)
    out2 = lin(xo, 4)[:, :, None, :] + lin(xo, 5)[:, None, :, :]
    return out1, out2


if __name__ == "__main__":
    B, N = 2, 8
    key = jax.random.PRNGKey(0)
    k1, k2, k3, k4 = jax.random.split(key, 4)

    x = jax.random.normal(k1, (B, N, D_MODEL), dtype=jnp.float32)
    g = jax.random.normal(k2, (B, N, N, D_MODEL), dtype=jnp.float32)

    # Upper-triangular mask (mask key y > query x) so every row has >=1 valid key.
    row = jnp.arange(N)[:, None]
    col = jnp.arange(N)[None, :]
    mask = jnp.broadcast_to((col > row).astype(jnp.float32), (B, N, N))

    # Deterministic synthetic parameters (8 Linear(d_model, d_model) layers).
    W_all = 0.1 * jax.random.normal(k3, (8, D_MODEL, D_MODEL), dtype=jnp.float32)
    b_all = 0.1 * jax.random.normal(k4, (8, 1, D_MODEL), dtype=jnp.float32)

    out_x, out_g = relation_attention(x, g, mask, W_all, b_all)
    jax.block_until_ready((out_x, out_g))

    ref_x, ref_g = reference(x, g, mask, W_all, b_all)
    assert jnp.allclose(out_x, ref_x, atol=1e-3, rtol=1e-3), "x output mismatch"
    assert jnp.allclose(out_g, ref_g, atol=1e-3, rtol=1e-3), "graph output mismatch"

    print("KERNEL_OK")
</pallas_src>

<mosaic_0001>
module attributes {stable_mosaic.version = 11 : i64} {
  func.func @relation_attention_kernel(%arg0: i32, %arg1: memref<16x32xf32, #tpu.memory_space<vmem>>, %arg2: memref<128x32xf32, #tpu.memory_space<vmem>>, %arg3: memref<2x8x8x4xf32, #tpu.memory_space<vmem>>, %arg4: memref<32x96xf32, #tpu.memory_space<vmem>>, %arg5: memref<1x96xf32, #tpu.memory_space<vmem>>, %arg6: memref<32x64xf32, #tpu.memory_space<vmem>>, %arg7: memref<1x64xf32, #tpu.memory_space<vmem>>, %arg8: memref<32x96xf32, #tpu.memory_space<vmem>>, %arg9: memref<1x96xf32, #tpu.memory_space<vmem>>, %arg10: memref<32x4xf32, #tpu.memory_space<vmem>>, %arg11: memref<4x32xf32, #tpu.memory_space<vmem>>, %arg12: memref<16x32xf32, #tpu.memory_space<vmem>>, %arg13: memref<2x8x256xf32, #tpu.memory_space<vmem>>) attributes {dimension_semantics = [#tpu.dimension_semantics<parallel>], iteration_bounds = array<i64: 1>, scalar_prefetch = 0 : i64, scratch_operands = 0 : i64, tpu.core_type = #tpu.core_type<tc>, window_params = [{transform_indices = @transform_0, window_bounds = array<i64: 16, 32>}, {transform_indices = @transform_1, window_bounds = array<i64: 128, 32>}, {transform_indices = @transform_2, window_bounds = array<i64: 2, 8, 8, 4>}, {pipeline_mode = #tpu.pipeline_mode<synchronous>, transform_indices = @transform_3, window_bounds = array<i64: 32, 96>}, {pipeline_mode = #tpu.pipeline_mode<synchronous>, transform_indices = @transform_4, window_bounds = array<i64: 1, 96>}, {pipeline_mode = #tpu.pipeline_mode<synchronous>, transform_indices = @transform_5, window_bounds = array<i64: 32, 64>}, {pipeline_mode = #tpu.pipeline_mode<synchronous>, transform_indices = @transform_6, window_bounds = array<i64: 1, 64>}, {pipeline_mode = #tpu.pipeline_mode<synchronous>, transform_indices = @transform_7, window_bounds = array<i64: 32, 96>}, {pipeline_mode = #tpu.pipeline_mode<synchronous>, transform_indices = @transform_8, window_bounds = array<i64: 1, 96>}, {pipeline_mode = #tpu.pipeline_mode<synchronous>, transform_indices = @transform_9, window_bounds = array<i64: 32, 4>}, {pipeline_mode = #tpu.pipeline_mode<synchronous>, transform_indices = @transform_10, window_bounds = array<i64: 4, 32>}, {transform_indices = @transform_11, window_bounds = array<i64: 16, 32>}, {transform_indices = @transform_12, window_bounds = array<i64: 2, 8, 256>}]} {
    %c0 = arith.constant 0 : index
    %c0_0 = arith.constant 0 : index
    %0 = vector.load %arg1[%c0, %c0_0] : memref<16x32xf32, #tpu.memory_space<vmem>>, vector<16x32xf32>
    %c0_1 = arith.constant 0 : index
    %c0_2 = arith.constant 0 : index
    %1 = vector.load %arg2[%c0_1, %c0_2] : memref<128x32xf32, #tpu.memory_space<vmem>>, vector<128x32xf32>
    %c0_3 = arith.constant 0 : index
    %c0_4 = arith.constant 0 : index
    %2 = vector.load %arg4[%c0_3, %c0_4] : memref<32x96xf32, #tpu.memory_space<vmem>>, vector<32x96xf32>
    %cst = arith.constant dense<0.000000e+00> : vector<16x96xf32>
    %3 = tpu.matmul %0, %2, %cst {dimension_numbers = #tpu.dot_dimension_numbers<[1], [0], [0], [1], [0, 0, 1, 1], [], []>} : vector<16x32xf32>, vector<32x96xf32>, vector<16x96xf32> -> vector<16x96xf32>
    %c0_5 = arith.constant 0 : index
    %c0_6 = arith.constant 0 : index
    %4 = vector.load %arg5[%c0_5, %c0_6] : memref<1x96xf32, #tpu.memory_space<vmem>>, vector<1x96xf32>
    %5 = vector.broadcast %4 : vector<1x96xf32> to vector<16x96xf32>
    %6 = arith.addf %3, %5 : vector<16x96xf32>
    %7 = vector.extract_strided_slice %6 {offsets = [0, 0], sizes = [16, 32], strides = [1, 1]} : vector<16x96xf32> to vector<16x32xf32>
    %8 = vector.shape_cast %7 : vector<16x32xf32> to vector<2x8x32xf32>
    %9 = vector.extract_strided_slice %6 {offsets = [0, 32], sizes = [16, 32], strides = [1, 1]} : vector<16x96xf32> to vector<16x32xf32>
    %10 = vector.shape_cast %9 : vector<16x32xf32> to vector<2x8x32xf32>
    %11 = vector.extract_strided_slice %6 {offsets = [0, 64], sizes = [16, 32], strides = [1, 1]} : vector<16x96xf32> to vector<16x32xf32>
    %12 = vector.shape_cast %11 : vector<16x32xf32> to vector<2x8x32xf32>
    %c0_7 = arith.constant 0 : index
    %c0_8 = arith.constant 0 : index
    %13 = vector.load %arg6[%c0_7, %c0_8] : memref<32x64xf32, #tpu.memory_space<vmem>>, vector<32x64xf32>
    %cst_9 = arith.constant dense<0.000000e+00> : vector<128x64xf32>
    %14 = tpu.matmul %1, %13, %cst_9 {dimension_numbers = #tpu.dot_dimension_numbers<[1], [0], [0], [1], [0, 0, 1, 1], [], []>} : vector<128x32xf32>, vector<32x64xf32>, vector<128x64xf32> -> vector<128x64xf32>
    %c0_10 = arith.constant 0 : index
    %c0_11 = arith.constant 0 : index
    %15 = vector.load %arg7[%c0_10, %c0_11] : memref<1x64xf32, #tpu.memory_space<vmem>>, vector<1x64xf32>
    %16 = vector.broadcast %15 : vector<1x64xf32> to vector<128x64xf32>
    %17 = arith.addf %14, %16 : vector<128x64xf32>
    %18 = vector.extract_strided_slice %17 {offsets = [0, 0], sizes = [128, 32], strides = [1, 1]} : vector<128x64xf32> to vector<128x32xf32>
    %19 = vector.shape_cast %18 : vector<128x32xf32> to vector<2x8x8x32xf32>
    %20 = vector.extract_strided_slice %17 {offsets = [0, 32], sizes = [128, 32], strides = [1, 1]} : vector<128x64xf32> to vector<128x32xf32>
    %21 = vector.shape_cast %20 : vector<128x32xf32> to vector<2x8x8x32xf32>
    %22 = vector.shape_cast %8 : vector<2x8x32xf32> to vector<2x8x1x32xf32>
    %23 = vector.shape_cast %10 : vector<2x8x32xf32> to vector<2x1x8x32xf32>
    %24 = vector.broadcast %23 : vector<2x1x8x32xf32> to vector<2x8x8x32xf32>
    %25 = arith.addf %24, %19 : vector<2x8x8x32xf32>
    %26 = vector.broadcast %22 : vector<2x8x1x32xf32> to vector<2x8x8x32xf32>
    %27 = arith.mulf %26, %25 : vector<2x8x8x32xf32>
    %28 = vector.shape_cast %27 : vector<2x8x8x32xf32> to vector<128x32xf32>
    %c0_12 = arith.constant 0 : index
    %c0_13 = arith.constant 0 : index
    %29 = vector.load %arg10[%c0_12, %c0_13] : memref<32x4xf32, #tpu.memory_space<vmem>>, vector<32x4xf32>
    %cst_14 = arith.constant dense<0.000000e+00> : vector<128x4xf32>
    %30 = tpu.matmul %28, %29, %cst_14 {dimension_numbers = #tpu.dot_dimension_numbers<[1], [0], [0], [1], [0, 0, 1, 1], [], []>} : vector<128x32xf32>, vector<32x4xf32>, vector<128x4xf32> -> vector<128x4xf32>
    %31 = vector.shape_cast %30 : vector<128x4xf32> to vector<2x8x8x4xf32>
    %cst_15 = arith.constant 0.353553385 : f32
    %32 = vector.broadcast %cst_15 : f32 to vector<2x8x8x4xf32>
    %33 = arith.mulf %31, %32 : vector<2x8x8x4xf32>
    %c0_16 = arith.constant 0 : index
    %c0_17 = arith.constant 0 : index
    %c0_18 = arith.constant 0 : index
    %c0_19 = arith.constant 0 : index
    %34 = vector.load %arg3[%c0_16, %c0_17, %c0_18, %c0_19] : memref<2x8x8x4xf32, #tpu.memory_space<vmem>>, vector<2x8x8x4xf32>
    %35 = arith.addf %33, %34 : vector<2x8x8x4xf32>
    %cst_20 = arith.constant dense<0xFF800000> : vector<2x8x4xf32>
    %36 = vector.multi_reduction <maximumf>, %35, %cst_20 [2] : vector<2x8x8x4xf32> to vector<2x8x4xf32>
    %37 = vector.shape_cast %36 : vector<2x8x4xf32> to vector<2x8x1x4xf32>
    %38 = vector.broadcast %37 : vector<2x8x1x4xf32> to vector<2x8x8x4xf32>
    %39 = arith.subf %35, %38 : vector<2x8x8x4xf32>
    %40 = math.exp %39 : vector<2x8x8x4xf32>
    %cst_21 = arith.constant dense<0.000000e+00> : vector<2x8x4xf32>
    %41 = vector.multi_reduction <add>, %40, %cst_21 [2] : vector<2x8x8x4xf32> to vector<2x8x4xf32>
    %42 = vector.shape_cast %41 : vector<2x8x4xf32> to vector<2x8x1x4xf32>
    %43 = vector.broadcast %42 : vector<2x8x1x4xf32> to vector<2x8x8x4xf32>
    %44 = arith.divf %40, %43 : vector<2x8x8x4xf32>
    %45 = vector.shape_cast %44 : vector<2x8x8x4xf32> to vector<128x4xf32>
    %c0_22 = arith.constant 0 : index
    %c0_23 = arith.constant 0 : index
    %46 = vector.load %arg11[%c0_22, %c0_23] : memref<4x32xf32, #tpu.memory_space<vmem>>, vector<4x32xf32>
    %cst_24 = arith.constant dense<0.000000e+00> : vector<128x32xf32>
    %47 = tpu.matmul %45, %46, %cst_24 {dimension_numbers = #tpu.dot_dimension_numbers<[1], [0], [0], [1], [0, 0, 1, 1], [], []>} : vector<128x4xf32>, vector<4x32xf32>, vector<128x32xf32> -> vector<128x32xf32>
    %48 = vector.shape_cast %47 : vector<128x32xf32> to vector<2x8x8x32xf32>
    %49 = vector.shape_cast %12 : vector<2x8x32xf32> to vector<2x1x8x32xf32>
    %50 = vector.broadcast %49 : vector<2x1x8x32xf32> to vector<2x8x8x32xf32>
    %51 = arith.addf %50, %21 : vector<2x8x8x32xf32>
    %52 = arith.mulf %48, %51 : vector<2x8x8x32xf32>
    %cst_25 = arith.constant dense<0.000000e+00> : vector<2x8x32xf32>
    %53 = vector.multi_reduction <add>, %52, %cst_25 [2] : vector<2x8x8x32xf32> to vector<2x8x32xf32>
    %54 = vector.shape_cast %53 : vector<2x8x32xf32> to vector<16x32xf32>
    %c0_26 = arith.constant 0 : index
    %c0_27 = arith.constant 0 : index
    %55 = vector.load %arg8[%c0_26, %c0_27] : memref<32x96xf32, #tpu.memory_space<vmem>>, vector<32x96xf32>
    %cst_28 = arith.constant dense<0.000000e+00> : vector<16x96xf32>
    %56 = tpu.matmul %54, %55, %cst_28 {dimension_numbers = #tpu.dot_dimension_numbers<[1], [0], [0], [1], [0, 0, 1, 1], [], []>} : vector<16x32xf32>, vector<32x96xf32>, vector<16x96xf32> -> vector<16x96xf32>
    %c0_29 = arith.constant 0 : index
    %c0_30 = arith.constant 0 : index
    %57 = vector.load %arg9[%c0_29, %c0_30] : memref<1x96xf32, #tpu.memory_space<vmem>>, vector<1x96xf32>
    %58 = vector.broadcast %57 : vector<1x96xf32> to vector<16x96xf32>
    %59 = arith.addf %56, %58 : vector<16x96xf32>
    %60 = vector.extract_strided_slice %59 {offsets = [0, 0], sizes = [16, 32], strides = [1, 1]} : vector<16x96xf32> to vector<16x32xf32>
    %c0_31 = arith.constant 0 : index
    %c0_32 = arith.constant 0 : index
    %61 = vector.load %arg12[%c0_31, %c0_32] : memref<16x32xf32, #tpu.memory_space<vmem>>, vector<16x32xf32>
    tpu.vector_store %arg12[%c0_31, %c0_32], %60 {strides = array<i32>} : memref<16x32xf32, #tpu.memory_space<vmem>>, vector<16x32xf32>,
    %62 = vector.extract_strided_slice %59 {offsets = [0, 32], sizes = [16, 32], strides = [1, 1]} : vector<16x96xf32> to vector<16x32xf32>
    %63 = vector.shape_cast %62 : vector<16x32xf32> to vector<2x8x32xf32>
    %64 = vector.extract_strided_slice %59 {offsets = [0, 64], sizes = [16, 32], strides = [1, 1]} : vector<16x96xf32> to vector<16x32xf32>
    %65 = vector.shape_cast %64 : vector<16x32xf32> to vector<2x8x32xf32>
    %66 = vector.extract_strided_slice %65 {offsets = [0, 0, 0], sizes = [2, 1, 32], strides = [1, 1, 1]} : vector<2x8x32xf32> to vector<2x1x32xf32>
    %67 = vector.broadcast %66 : vector<2x1x32xf32> to vector<2x8x32xf32>
    %68 = arith.addf %63, %67 : vector<2x8x32xf32>
    %69 = vector.extract_strided_slice %65 {offsets = [0, 1, 0], sizes = [2, 1, 32], strides = [1, 1, 1]} : vector<2x8x32xf32> to vector<2x1x32xf32>
    %70 = vector.broadcast %69 : vector<2x1x32xf32> to vector<2x8x32xf32>
    %71 = arith.addf %63, %70 : vector<2x8x32xf32>
    %72 = vector.extract_strided_slice %65 {offsets = [0, 2, 0], sizes = [2, 1, 32], strides = [1, 1, 1]} : vector<2x8x32xf32> to vector<2x1x32xf32>
    %73 = vector.broadcast %72 : vector<2x1x32xf32> to vector<2x8x32xf32>
    %74 = arith.addf %63, %73 : vector<2x8x32xf32>
    %75 = vector.extract_strided_slice %65 {offsets = [0, 3, 0], sizes = [2, 1, 32], strides = [1, 1, 1]} : vector<2x8x32xf32> to vector<2x1x32xf32>
    %76 = vector.broadcast %75 : vector<2x1x32xf32> to vector<2x8x32xf32>
    %77 = arith.addf %63, %76 : vector<2x8x32xf32>
    %78 = vector.extract_strided_slice %65 {offsets = [0, 4, 0], sizes = [2, 1, 32], strides = [1, 1, 1]} : vector<2x8x32xf32> to vector<2x1x32xf32>
    %79 = vector.broadcast %78 : vector<2x1x32xf32> to vector<2x8x32xf32>
    %80 = arith.addf %63, %79 : vector<2x8x32xf32>
    %81 = vector.extract_strided_slice %65 {offsets = [0, 5, 0], sizes = [2, 1, 32], strides = [1, 1, 1]} : vector<2x8x32xf32> to vector<2x1x32xf32>
    %82 = vector.broadcast %81 : vector<2x1x32xf32> to vector<2x8x32xf32>
    %83 = arith.addf %63, %82 : vector<2x8x32xf32>
    %84 = vector.extract_strided_slice %65 {offsets = [0, 6, 0], sizes = [2, 1, 32], strides = [1, 1, 1]} : vector<2x8x32xf32> to vector<2x1x32xf32>
    %85 = vector.broadcast %84 : vector<2x1x32xf32> to vector<2x8x32xf32>
    %86 = arith.addf %63, %85 : vector<2x8x32xf32>
    %87 = vector.extract_strided_slice %65 {offsets = [0, 7, 0], sizes = [2, 1, 32], strides = [1, 1, 1]} : vector<2x8x32xf32> to vector<2x1x32xf32>
    %88 = vector.broadcast %87 : vector<2x1x32xf32> to vector<2x8x32xf32>
    %89 = arith.addf %63, %88 : vector<2x8x32xf32>
    %90 = tpu.concatenate %68, %71, %74, %77, %80, %83, %86, %89 in 2 : vector<2x8x32xf32>, vector<2x8x32xf32>, vector<2x8x32xf32>, vector<2x8x32xf32>, vector<2x8x32xf32>, vector<2x8x32xf32>, vector<2x8x32xf32>, vector<2x8x32xf32> -> vector<2x8x256xf32>
    %c0_33 = arith.constant 0 : index
    %c0_34 = arith.constant 0 : index
    %c0_35 = arith.constant 0 : index
    %91 = vector.load %arg13[%c0_33, %c0_34, %c0_35] : memref<2x8x256xf32, #tpu.memory_space<vmem>>, vector<2x8x256xf32>
    tpu.vector_store %arg13[%c0_33, %c0_34, %c0_35], %90 {strides = array<i32>} : memref<2x8x256xf32, #tpu.memory_space<vmem>>, vector<2x8x256xf32>,
    return
  }
  func.func @transform_0(%arg0: i32) -> (i32, i32) {
    %c0_i32 = arith.constant 0 : i32
    %c0_i32_0 = arith.constant 0 : i32
    return %arg0, %c0_i32 : i32, i32
  }
  func.func @transform_1(%arg0: i32) -> (i32, i32) {
    %c0_i32 = arith.constant 0 : i32
    %c0_i32_0 = arith.constant 0 : i32
    return %arg0, %c0_i32 : i32, i32
  }
  func.func @transform_2(%arg0: i32) -> (i32, i32, i32, i32) {
    %c0_i32 = arith.constant 0 : i32
    %c0_i32_0 = arith.constant 0 : i32
    %c0_i32_1 = arith.constant 0 : i32
    %c0_i32_2 = arith.constant 0 : i32
    return %arg0, %c0_i32, %c0_i32_0, %c0_i32_1 : i32, i32, i32, i32
  }
  func.func @transform_3(%arg0: i32) -> (i32, i32) {
    %c0_i32 = arith.constant 0 : i32
    %c0_i32_0 = arith.constant 0 : i32
    %c0_i32_1 = arith.constant 0 : i32
    return %c0_i32, %c0_i32_0 : i32, i32
  }
  func.func @transform_4(%arg0: i32) -> (i32, i32) {
    %c0_i32 = arith.constant 0 : i32
    %c0_i32_0 = arith.constant 0 : i32
    %c0_i32_1 = arith.constant 0 : i32
    return %c0_i32, %c0_i32_0 : i32, i32
  }
  func.func @transform_5(%arg0: i32) -> (i32, i32) {
    %c0_i32 = arith.constant 0 : i32
    %c0_i32_0 = arith.constant 0 : i32
    %c0_i32_1 = arith.constant 0 : i32
    return %c0_i32, %c0_i32_0 : i32, i32
  }
  func.func @transform_6(%arg0: i32) -> (i32, i32) {
    %c0_i32 = arith.constant 0 : i32
    %c0_i32_0 = arith.constant 0 : i32
    %c0_i32_1 = arith.constant 0 : i32
    return %c0_i32, %c0_i32_0 : i32, i32
  }
  func.func @transform_7(%arg0: i32) -> (i32, i32) {
    %c0_i32 = arith.constant 0 : i32
    %c0_i32_0 = arith.constant 0 : i32
    %c0_i32_1 = arith.constant 0 : i32
    return %c0_i32, %c0_i32_0 : i32, i32
  }
  func.func @transform_8(%arg0: i32) -> (i32, i32) {
    %c0_i32 = arith.constant 0 : i32
    %c0_i32_0 = arith.constant 0 : i32
    %c0_i32_1 = arith.constant 0 : i32
    return %c0_i32, %c0_i32_0 : i32, i32
  }
  func.func @transform_9(%arg0: i32) -> (i32, i32) {
    %c0_i32 = arith.constant 0 : i32
    %c0_i32_0 = arith.constant 0 : i32
    %c0_i32_1 = arith.constant 0 : i32
    return %c0_i32, %c0_i32_0 : i32, i32
  }
  func.func @transform_10(%arg0: i32) -> (i32, i32) {
    %c0_i32 = arith.constant 0 : i32
    %c0_i32_0 = arith.constant 0 : i32
    %c0_i32_1 = arith.constant 0 : i32
    return %c0_i32, %c0_i32_0 : i32, i32
  }
  func.func @transform_11(%arg0: i32) -> (i32, i32) {
    %c0_i32 = arith.constant 0 : i32
    %c0_i32_0 = arith.constant 0 : i32
    return %arg0, %c0_i32 : i32, i32
  }
  func.func @transform_12(%arg0: i32) -> (i32, i32, i32) {
    %c0_i32 = arith.constant 0 : i32
    %c0_i32_0 = arith.constant 0 : i32
    %c0_i32_1 = arith.constant 0 : i32
    return %arg0, %c0_i32, %c0_i32_0 : i32, i32, i32
  }
}

</mosaic_0001>

<bundles_post_ra>
// kernel: tpu_custom_call.1
= control target key start
LH: loop header
LB: loop body
LE: loop exit
PB: predicated region body
PF: predicated region fallthrough
CT: control target
= control target key end

     0   :  { %18 = vsyncpa [#allocation3], 0  ;;  %vm71_vm0 = vcmask 261120   ;;  %s3130_s0 = inlined_call_operand.vmem [shape: f32[16,32], index: 0, kind: input, shape index: {}]   ;;  %s3131_s1 = inlined_call_operand.vmem [shape: f32[128,32], index: 1, kind: input, shape index: {}]   ;;  %s3132_s2 = inlined_call_operand.vmem [shape: f32[2,8,8,4], index: 2, kind: input, shape index: {}]   ;;  %s3133_s3 = inlined_call_operand.vmem [shape: f32[32,96], index: 3, kind: input, shape index: {}]   ;;  %s3134_s4 = inlined_call_operand.vmem [shape: f32[1,96], index: 4, kind: input, shape index: {}]   ;;  %s3135_s5 = inlined_call_operand.vmem [shape: f32[32,64], index: 5, kind: input, shape index: {}]   ;;  %s3136_s6 = inlined_call_operand.vmem [shape: f32[1,64], index: 6, kind: input, shape index: {}]   ;;  %s3137_s7 = inlined_call_operand.vmem [shape: f32[32,96], index: 7, kind: input, shape index: {}]   ;;  %s3138_s8 = inlined_call_operand.vmem [shape: f32[1,96], index: 8, kind: input, shape index: {}]   ;;  %s3139_s9 = inlined_call_operand.vmem [shape: f32[32,4], index: 9, kind: input, shape index: {}]   ;;  %s3140_s10 = inlined_call_operand.vmem [shape: f32[4,32], index: 10, kind: input, shape index: {}]   ;;  %s3141_s11 = inlined_call_operand.hbm [shape: f32[16,32], index: 11, kind: output, shape index: {0}]   ;;  %s3142_s12 = inlined_call_operand.hbm [shape: f32[2,8,256], index: 12, kind: output, shape index: {1}]  }
   0x1   :  { %v60_v0 = vld [vmem:[%s3133_s3] sm:$0xff]  ;;  %v61_v1 = vld [vmem:[%s3133_s3 + $0x8] sm:$0xff]  ;;  %v62_v2 = vld [vmem:[%s3133_s3 + $0x10] sm:$0xff] }
   0x2   :  { %v2229_v3 = vpack.c.bf16 %v61_v1, %v60_v0  ;;  %v63_v4 = vld [vmem:[%s3133_s3 + $0x18] sm:$0xff]  ;;  %v42_v5 = vld [vmem:[%s3130_s0] sm:$0xff]  ;;  %v154_v8 = vld [vmem:[%s3135_s5 + $0x8] sm:$0xff] }
   0x3   :  { %v2233_v6 = vpack.c.bf16 %v63_v4, %v62_v2  ;;  %2125 = vmatprep.mubr.msk.f32.mxu0 %vm71_vm0, %v42_v5  ;;  %v153_v7 = vld [vmem:[%s3135_s5] sm:$0xff]  ;;  %v155_v9 = vld [vmem:[%s3135_s5 + $0x10] sm:$0xff]  ;;  %v156_v11 = vld [vmem:[%s3135_s5 + $0x18] sm:$0xff] }
   0x4   :  { %2230 = vmatprep.subr.bf16.mxu0 %v2229_v3  ;;  %v2237_v10 = vpack.c.bf16 %v154_v8, %v153_v7  ;;  %v48_v12 = vld [vmem:[%s3131_s1 + $0x20] sm:$0xff]  ;;  %v2241_v13 = vpack.c.bf16 %v156_v11, %v155_v9  ;;  %v43_v14 = vld [vmem:[%s3130_s0 + $0x8] sm:$0xff] }
   0x5   :  { %2232 = vmatpush3.bf16.msra.mxu0 %v2229_v3  ;;  %2142 = vmatprep.mubr.msk.f32.mxu1 %vm71_vm0, %v48_v12 }
   0x6   :  { %2234 = vmatprep.subr.bf16.mxu0 %v2233_v6  ;;  %2261 = vmatprep.subr.bf16.mxu1 %v2237_v10 }
   0x7   :  { %2263 = vmatpush3.bf16.msra.mxu1 %v2237_v10 }
   0x8   :  { %2262 = vmatprep.subr.bf16.mxu1 %v2241_v13 }
   0x9   :  { %2236 = vmatpush3.bf16.msra.mxu0 %v2233_v6 }
   0xa   :  { %19 = vsyncpa [#allocation5], 0  ;;  %2238 = vmatprep.subr.bf16.mxu0 %v2237_v10  ;;  %v44_v15 = vld [vmem:[%s3131_s1] sm:$0xff]  ;;  %v49_v16 = vld [vmem:[%s3131_s1 + $0x28] sm:$0xff]  ;;  %s2388_s23 = smov 96   ;;  %vm1296_vm1 = vcmask 1043456  }
   0xb   :  { %2264 = vmatpush3.bf16.msra.mxu1 %v2241_v13  ;;  %v50_v17 = vld [vmem:[%s3131_s1 + $0x30] sm:$0xff]  ;;  %v51_v18 = vld [vmem:[%s3131_s1 + $0x38] sm:$0xff]  ;;  %v52_v19 = vld [vmem:[%s3131_s1 + $0x40] sm:$0xff]  ;;  %vm942_vm2 = vcmask 31744   ;;  %vm1648_vm3 = vcmask 1041409   ;;  %vm1650_vm4 = vcmask 1042434  }
   0xc   :  { %2126 = vmatmul.mubr.msk.f32.vlgmr.msra.gmra.mrb[0].mxu0 %vm71_vm0, %v43_v14  ;;  %v45_v20 = vld [vmem:[%s3131_s1 + $0x8] sm:$0xff]  ;;  %v46_v21 = vld [vmem:[%s3131_s1 + $0x10] sm:$0xff]  ;;  %v47_v24 = vld [vmem:[%s3131_s1 + $0x18] sm:$0xff]  ;;  %vm1652_vm5 = vcmask 1043459   ;;  %vm1654_vm6 = vcmask 1044484   ;;  %vm1656_vm7 = vcmask 1045509  }
   0xd   :  { %2240 = vmatpush3.bf16.msra.mxu0 %v2237_v10  ;;  %2136 = vmatprep.mubr.msk.f32.mxu0 %vm71_vm0, %v44_v15  ;;  %v53_v22 = vld [vmem:[%s3131_s1 + $0x48] sm:$0xff]  ;;  %v54_v23 = vld [vmem:[%s3131_s1 + $0x50] sm:$0xff]  ;;  %v55_v25 = vld [vmem:[%s3131_s1 + $0x58] sm:$0xff]  ;;  %vm1658_vm8 = vcmask 1046534   ;;  %vm1660_vm9 = vcmask 1047559  }
   0xe   :  { %2242 = vmatprep.subr.bf16.mxu0 %v2241_v13  ;;  %2143 = vmatmul.mubr.msk.f32.vlgmr.msra.gmra.mrb[0].mxu1 %vm71_vm0, %v49_v16  ;;  %v56_v26 = vld [vmem:[%s3131_s1 + $0x60] sm:$0xff]  ;;  %v57_v27 = vld [vmem:[%s3131_s1 + $0x68] sm:$0xff]  ;;  %v58_v28 = vld [vmem:[%s3131_s1 + $0x70] sm:$0xff] }
   0xf   :  { %2145 = vmatprep.mubr.msk.f32.mxu1 %vm71_vm0, %v50_v17  ;;  %v59_v29 = vld [vmem:[%s3131_s1 + $0x78] sm:$0xff]  ;;  %v1995_v35 = vld [vmem:[%s3136_s6] ss:$0 sm:$0xff]  ;;  %s2387_s1 = smov 32   ;;  %v698_v2 = vld [vmem:[%s3139_s9 + $0x8] sm:$0xff] }
  0x10   :  { %v697_v1 = vld [vmem:[%s3139_s9] sm:$0xff]  ;;  %v699_v4 = vld [vmem:[%s3139_s9 + $0x10] sm:$0xff]  ;;  %v700_v5 = vld [vmem:[%s3139_s9 + $0x18] sm:$0xff] }
  0x11   :  { %2244 = vmatpush3.bf16.msra.mxu0 %v2241_v13  ;;  %v2245_v3 = vpack.c.bf16 %v698_v2, %v697_v1  ;;  %v2249_v6 = vpack.c.bf16 %v700_v5, %v699_v4  ;;  %v1992_v7 = vld [vmem:[%s3134_s4] ss:$0 sm:$0xff]  ;;  %s2389_s4 = smov 64  }
  0x12   :  { %2146 = vmatmul.mubr.msk.f32.gmra.mrb[2].mxu1 %vm71_vm0, %v51_v18 }
  0x13   :  { %2148 = vmatprep.mubr.msk.f32.mxu1 %vm71_vm0, %v52_v19  ;;  %2246 = vmatprep.subr.bf16.mxu0 %v2245_v3 }
  0x14   :  { %2137 = vmatmul.mubr.msk.f32.vlgmr.msra.gmra.mrb[2].mxu0 %vm71_vm0, %v45_v20 }
  0x15   :  { %2139 = vmatprep.mubr.msk.f32.mxu0 %vm71_vm0, %v46_v21  ;;  %2248 = vmatpush3.bf16.msra.mxu0 %v2245_v3 }
  0x16   :  { %2149 = vmatmul.mubr.msk.f32.gmra.mrb[4].mxu1 %vm71_vm0, %v53_v22  ;;  %2250 = vmatprep.subr.bf16.mxu0 %v2249_v6 }
  0x17   :  { %2151 = vmatprep.mubr.msk.f32.mxu1 %vm71_vm0, %v54_v23 }
  0x18   :  { %2140 = vmatmul.mubr.msk.f32.gmra.mrb[4].mxu0 %vm71_vm0, %v47_v24 }
  0x19   :  { %2252 = vmatpush3.bf16.msra.mxu0 %v2249_v6 }
  0x1a   :  { %2152 = vmatmul.mubr.msk.f32.gmra.mrb[6].mxu1 %vm71_vm0, %v55_v25 }
  0x1b   :  { %2154 = vmatprep.mubr.msk.f32.mxu1 %vm71_vm0, %v56_v26 }
  0x1e   :  { %2155 = vmatmul.mubr.msk.f32.gmra.mrb[8].mxu1 %vm71_vm0, %v57_v27 }
  0x1f   :  { %2157 = vmatprep.mubr.msk.f32.mxu1 %vm71_vm0, %v58_v28 }
  0x22   :  { %2158 = vmatmul.mubr.msk.f32.gmra.mrb[10].mxu1 %vm71_vm0, %v59_v29 }
  0xdf   :  { %v2558_v30 = vpop.f32.mrb[0].mxu0 }
  0xe0   :  { %v144_v31 = vpop.f32.mrb[1].mxu0  ;;  %v2609_v23 = vadd.f32 %v2558_v30, %v1992_v7 }
  0xe1   :  { %v2144_v32 = vpop.f32.mrb[0].mxu1  ;;  %v2594_v8 = vadd.f32 %v1992_v7, %v144_v31 }
  0xe2   :  { %v298_v33 = vpop.f32.mrb[1].mxu1  ;;  %v304_v53 = vadd.f32 %v2144_v32, %v1995_v35 }
  0xe3   :  { %v299_v48 = vadd.f32 %v1995_v35, %v298_v33 }
  0xe5   :  { %v2147_v34 = vpop.f32.mrb[2].mxu1 }
  0xe6   :  { %v308_v36 = vpop.f32.mrb[3].mxu1  ;;  %v314_v57 = vadd.f32 %v2147_v34, %v1995_v35 }
  0xe7   :  { %v2138_v37 = vpop.f32.mrb[2].mxu0  ;;  %v309_v52 = vadd.f32 %v1995_v35, %v308_v36 }
  0xe8   :  { %v278_v38 = vpop.f32.mrb[3].mxu0  ;;  %v284_v44 = vadd.f32 %v2138_v37, %v1995_v35 }
  0xe9   :  { %v279_v39 = vadd.f32 %v1995_v35, %v278_v38  ;;  %v2150_v40 = vpop.f32.mrb[4].mxu1 }
  0xea   :  { %v318_v41 = vpop.f32.mrb[5].mxu1  ;;  %v324_v59 = vadd.f32 %v2150_v40, %v1995_v35 }
  0xeb   :  { %v2141_v42 = vpop.f32.mrb[4].mxu0  ;;  %473 = vrot.lane.b32.xlu0 %v279_v39, %s2387_s1  ;;  %v319_v56 = vadd.f32 %v1995_v35, %v318_v41 }
  0xec   :  { %v288_v43 = vpop.f32.mrb[5].mxu0  ;;  %v294_v49 = vadd.f32 %v2141_v42, %v1995_v35  ;;  %v2390_v42 = vmov 1966171168  }
  0xed   :  { %v289_v45 = vadd.f32 %v1995_v35, %v288_v43  ;;  %v2153_v46 = vpop.f32.mrb[6].mxu1  ;;  %v361_v43 = vunpack.c.l.s4 %v2390_v42 }
  0xee   :  { %v328_v47 = vpop.f32.mrb[7].mxu1  ;;  %v334_v61 = vadd.f32 %v2153_v46, %v1995_v35 }
  0xef   :  { %477 = vrot.lane.b32.xlu1 %v289_v45, %s2387_s1  ;;  %475 = vrot.lane.b32.xlu0 %v284_v44, %s2387_s1  ;;  %v329_v58 = vadd.f32 %v1995_v35, %v328_v47  ;;  %v363_v44 = vlaneseq  ;;  %v362_v45 = vunpack.c.0.s8 %v361_v43 }
  0xf1   :  { %v2156_v50 = vpop.f32.mrb[8].mxu1  ;;  %v2647_v46 = vshrl.u32 %v363_v44, 7 }
  0xf2   :  { %v338_v51 = vpop.f32.mrb[9].mxu1  ;;  %v344_v63 = vadd.f32 %v2156_v50, %v1995_v35 }
  0xf3   :  { %479 = vrot.lane.b32.xlu1 %v294_v49, %s2387_s1  ;;  %481 = vrot.lane.b32.xlu0 %v299_v48, %s2387_s1  ;;  %v339_v60 = vadd.f32 %v1995_v35, %v338_v51  ;;  %v2650_v47 = vsub.s32 %v362_v45, %v2647_v46  ;;  %v359_v49 = vcombine.high %v2594_v8, %v2594_v8  ;;  %v2657_v50 = vsub.s32 0, %v2647_v46 }
  0xf5   :  { %v2159_v54 = vpop.f32.mrb[10].mxu1  ;;  %v366_v48 = vrot.slane %v2594_v8, %v2650_v47  ;;  %v415_v4 = vrot.slane %v2609_v23, %v2650_v47 }
  0xf6   :  { %v348_v55 = vpop.f32.mrb[11].mxu1  ;;  %v354_v0 = vadd.f32 %v2159_v54, %v1995_v35 }
  0xf7   :  { %483 = vrot.lane.b32.xlu1 %v304_v53, %s2387_s1  ;;  %485 = vrot.lane.b32.xlu0 %v309_v52, %s2387_s1  ;;  %v349_v62 = vadd.f32 %v1995_v35, %v348_v55  ;;  %v382_v51 = vrot.slane %v366_v48, %v2650_v47  ;;  %v374_v52 = vcombine.high %v366_v48, %v366_v48 }
  0xf8   :  { %v373_v53 = vrot.slane %v359_v49, %v2650_v47 }
  0xf9   :  { %v540_v54 = vrot.slane %v382_v51, %v2657_v50  ;;  %v396_v55 = vrot.slane %v374_v52, %v2650_v47 }
  0xfb   :  { %487 = vrot.lane.b32.xlu1 %v314_v57, %s2387_s1  ;;  %489 = vrot.lane.b32.xlu0 %v319_v56, %s2387_s1  ;;  %v404_v56 = vcombine.high %v382_v51, %v382_v51 }
  0xff   :  { %491 = vrot.lane.b32.xlu1 %v324_v59, %s2387_s1  ;;  %493 = vrot.lane.b32.xlu0 %v329_v58, %s2387_s1  ;;  %v389_v59 = vrot.slane %v373_v53, %v2650_v47 }
 0x101   :  { %v556_v6 = vrot.slane %v389_v59, %v2657_v50 }
 0x103   :  { %495 = vrot.lane.b32.xlu1 %v334_v61, %s2387_s1  ;;  %497 = vrot.lane.b32.xlu0 %v339_v60, %s2387_s1  ;;  %v544_v60 = vrot.slane %v396_v55, %v2657_v50  ;;  %v548_v61 = vrot.slane %v404_v56, %v2657_v50 }
 0x107   :  { %499 = vrot.lane.b32.xlu1 %v344_v63, %s2387_s1  ;;  %501 = vrot.lane.b32.xlu0 %v349_v62, %s2387_s1  ;;  %v406_v62 = vcombine.high %v396_v55, %v396_v55  ;;  %v375_v63 = vcombine.high %v373_v53, %v373_v53 }
 0x109   :  { %v552_v5 = vrot.slane %v406_v62, %v2657_v50  ;;  %v403_v7 = vrot.slane %v375_v63, %v2650_v47  ;;  %v911_v63 = vld [vmem:[%s3132_s2 + $0x8] sm:$0xff] }
 0x10b   :  { %503 = vrot.lane.b32.xlu1 %v354_v0, %s2387_s1 }
 0x15d   :  { %v474_v9 = vpop.permute.xlu0 %473 }
 0x15e   :  { %v521_v10 = vadd.f32 %v474_v9, %v2594_v8 }
 0x160   :  { %633 = vrot.lane.b32.xlu0 %v521_v10, %s2388_s23 }
 0x161   :  { %v478_v11 = vpop.permute.xlu1 %477  ;;  %v476_v12 = vpop.permute.xlu0 %475 }
 0x162   :  { %v523_v13 = vadd.f32 %v478_v11, %v2594_v8  ;;  %v522_v14 = vadd.f32 %v476_v12, %v2594_v8 }
 0x164   :  { %635 = vrot.lane.b32.xlu1 %v522_v14, %s2388_s23  ;;  %637 = vrot.lane.b32.xlu0 %v523_v13, %s2388_s23 }
 0x165   :  { %v480_v15 = vpop.permute.xlu1 %479  ;;  %v482_v16 = vpop.permute.xlu0 %481 }
 0x166   :  { %v524_v17 = vadd.f32 %v480_v15, %v2594_v8  ;;  %v525_v18 = vadd.f32 %v482_v16, %v2594_v8  ;;  %v560_v15 = vrot.slane %v403_v7, %v2657_v50 }
 0x168   :  { %639 = vrot.lane.b32.xlu1 %v524_v17, %s2388_s23  ;;  %641 = vrot.lane.b32.xlu0 %v525_v18, %s2388_s23 }
 0x169   :  { %v484_v19 = vpop.permute.xlu1 %483  ;;  %v486_v20 = vpop.permute.xlu0 %485 }
 0x16a   :  { %v526_v21 = vadd.f32 %v484_v19, %v2594_v8  ;;  %v527_v22 = vadd.f32 %v486_v20, %v2594_v8 }
 0x16c   :  { %643 = vrot.lane.b32.xlu1 %v526_v21, %s2388_s23  ;;  %645 = vrot.lane.b32.xlu0 %v527_v22, %s2388_s23 }
 0x16d   :  { %v488_v24 = vpop.permute.xlu1 %487  ;;  %v490_v25 = vpop.permute.xlu0 %489 }
 0x16e   :  { %v528_v26 = vadd.f32 %v488_v24, %v2594_v8  ;;  %v529_v27 = vadd.f32 %v490_v25, %v2609_v23  ;;  %v405_v8 = vcombine.high %v389_v59, %v389_v59 }
 0x170   :  { %647 = vrot.lane.b32.xlu1 %v528_v26, %s2388_s23  ;;  %649 = vrot.lane.b32.xlu0 %v529_v27, %s2388_s23  ;;  %v564_v16 = vrot.slane %v405_v8, %v2657_v50 }
 0x171   :  { %v492_v28 = vpop.permute.xlu1 %491  ;;  %v494_v29 = vpop.permute.xlu0 %493 }
 0x172   :  { %v530_v31 = vadd.f32 %v492_v28, %v2609_v23  ;;  %v531_v30 = vadd.f32 %v494_v29, %v2609_v23 }
 0x174   :  { %651 = vrot.lane.b32.xlu1 %v530_v31, %s2388_s23  ;;  %653 = vrot.lane.b32.xlu0 %v531_v30, %s2388_s23 }
 0x175   :  { %v496_v32 = vpop.permute.xlu1 %495  ;;  %v498_v33 = vpop.permute.xlu0 %497 }
 0x176   :  { %v532_v34 = vadd.f32 %v496_v32, %v2609_v23  ;;  %v533_v35 = vadd.f32 %v498_v33, %v2609_v23 }
 0x178   :  { %655 = vrot.lane.b32.xlu1 %v532_v34, %s2388_s23  ;;  %657 = vrot.lane.b32.xlu0 %v533_v35, %s2388_s23 }
 0x179   :  { %v500_v36 = vpop.permute.xlu1 %499  ;;  %v502_v37 = vpop.permute.xlu0 %501 }
 0x17a   :  { %v534_v38 = vadd.f32 %v500_v36, %v2609_v23  ;;  %v535_v39 = vadd.f32 %v502_v37, %v2609_v23 }
 0x17c   :  { %659 = vrot.lane.b32.xlu1 %v534_v38, %s2388_s23  ;;  %661 = vrot.lane.b32.xlu0 %v535_v39, %s2388_s23 }
 0x17d   :  { %v504_v40 = vpop.permute.xlu1 %503 }
 0x17e   :  { %v536_v41 = vadd.f32 %v504_v40, %v2609_v23 }
 0x180   :  { %663 = vrot.lane.b32.xlu1 %v536_v41, %s2388_s23  ;;  %1445 = vrot.lane.b32.xlu0 %v521_v10, %s2389_s4 }
 0x184   :  { %1447 = vrot.lane.b32.xlu1 %v522_v14, %s2389_s4  ;;  %1449 = vrot.lane.b32.xlu0 %v523_v13, %s2389_s4  ;;  %v423_v13 = vcombine.high %v415_v4, %v415_v4  ;;  %v408_v14 = vcombine.high %v2609_v23, %v2609_v23 }
 0x186   :  { %v445_v24 = vrot.slane %v423_v13, %v2650_v47 }
 0x188   :  { %1461 = vrot.lane.b32.xlu1 %v529_v27, %s2389_s4  ;;  %1463 = vrot.lane.b32.xlu0 %v530_v31, %s2389_s4  ;;  %v422_v27 = vrot.slane %v408_v14, %v2650_v47  ;;  %v576_v32 = vrot.slane %v445_v24, %v2657_v50 }
 0x18a   :  { %v424_v36 = vcombine.high %v422_v27, %v422_v27 }
 0x18c   :  { %1451 = vrot.lane.b32.xlu1 %v524_v17, %s2389_s4  ;;  %1465 = vrot.lane.b32.xlu0 %v531_v30, %s2389_s4  ;;  %v407_v17 = vcombine.high %v403_v7, %v403_v7  ;;  %v452_v43 = vrot.slane %v424_v36, %v2650_v47  ;;  %v913_v7 = vld [vmem:[%s3132_s2 + $0x18] sm:$0xff] }
 0x18e   :  { %v568_v23 = vrot.slane %v407_v17, %v2657_v50  ;;  %v592_v52 = vrot.slane %v452_v43, %v2657_v50 }
 0x190   :  { %1453 = vrot.lane.b32.xlu1 %v525_v18, %s2389_s4  ;;  %1467 = vrot.lane.b32.xlu0 %v532_v34, %s2389_s4  ;;  %v431_v18 = vrot.slane %v415_v4, %v2650_v47  ;;  %v455_v34 = vcombine.high %v445_v24, %v445_v24 }
 0x192   :  { %v572_v25 = vrot.slane %v431_v18, %v2657_v50 }
 0x194   :  { %1455 = vrot.lane.b32.xlu1 %v526_v21, %s2389_s4  ;;  %1469 = vrot.lane.b32.xlu0 %v533_v35, %s2389_s4  ;;  %v438_v35 = vrot.slane %v422_v27, %v2650_v47 }
 0x196   :  { %v588_v42 = vrot.slane %v438_v35, %v2657_v50  ;;  %v454_v44 = vcombine.high %v438_v35, %v438_v35 }
 0x198   :  { %1457 = vrot.lane.b32.xlu1 %v527_v22, %s2389_s4  ;;  %1471 = vrot.lane.b32.xlu0 %v534_v38, %s2389_s4  ;;  %v596_v53 = vrot.slane %v454_v44, %v2657_v50 }
 0x19c   :  { %1459 = vrot.lane.b32.xlu1 %v528_v26, %s2389_s4  ;;  %1473 = vrot.lane.b32.xlu0 %v535_v39, %s2389_s4  ;;  %v453_v26 = vcombine.high %v431_v18, %v431_v18 }
 0x19e   :  { %v580_v33 = vrot.slane %v453_v26, %v2657_v50 }
 0x1a0   :  { %1475 = vrot.lane.b32.xlu1 %v536_v41, %s2389_s4  ;;  %v584_v41 = vrot.slane %v455_v34, %v2657_v50 }
 0x1d2   :  { %v634_v57 = vpop.permute.xlu0 %633 }
 0x1d3   :  { %v681_v58 = vmul.f32 %v634_v57, %v540_v54  ;;  %v456_v54 = vcombine.high %v452_v43, %v452_v43 }
 0x1d5   :  { %2168 = vmatprep.mubr.msk.f32.mxu0 %vm71_vm0, %v681_v58  ;;  %v600_v58 = vrot.slane %v456_v54, %v2657_v50 }
 0x1d6   :  { %v636_v0 = vpop.permute.xlu1 %635  ;;  %v638_v1 = vpop.permute.xlu0 %637 }
 0x1d7   :  { %v682_v2 = vmul.f32 %v636_v0, %v544_v60  ;;  %v683_v3 = vmul.f32 %v638_v1, %v548_v61  ;;  %v1247_v61 = vld [vmem:[%s3140_s10] sm:$0xf] }
 0x1d8   :  { %2192 = vmatprep.subr.msk.mxu1 %vm1296_vm1, %v1247_v61 }
 0x1d9   :  { %2169 = vmatmul.mubr.msk.f32.vlgmr.msra.gmra.mrb[6].mxu0 %vm71_vm0, %v682_v2  ;;  %2193 = vmatpush3.msk.msra.mxu1 %vm1296_vm1, %v1247_v61  ;;  %v910_v2 = vld [vmem:[%s3132_s2] sm:$0xff] }
 0x1da   :  { %v640_v9 = vpop.permute.xlu1 %639  ;;  %v642_v10 = vpop.permute.xlu0 %641  ;;  %2171 = vmatprep.mubr.msk.f32.mxu0 %vm71_vm0, %v683_v3 }
 0x1db   :  { %v684_v11 = vmul.f32 %v640_v9, %v552_v5  ;;  %v685_v12 = vmul.f32 %v642_v10, %v556_v6 }
 0x1dd   :  { %2172 = vmatmul.mubr.msk.f32.gmra.mrb[8].mxu0 %vm71_vm0, %v684_v11  ;;  %v912_v11 = vld [vmem:[%s3132_s2 + $0x10] sm:$0xff] }
 0x1de   :  { %v644_v19 = vpop.permute.xlu1 %643  ;;  %v646_v20 = vpop.permute.xlu0 %645  ;;  %2174 = vmatprep.mubr.msk.f32.mxu0 %vm71_vm0, %v685_v12 }
 0x1df   :  { %v686_v21 = vmul.f32 %v644_v19, %v560_v15  ;;  %v687_v22 = vmul.f32 %v646_v20, %v564_v16  ;;  %v915_v20 = vld [vmem:[%s3132_s2 + $0x28] sm:$0xff] }
 0x1e1   :  { %2175 = vmatmul.mubr.msk.f32.gmra.mrb[10].mxu0 %vm71_vm0, %v686_v21 }
 0x1e2   :  { %v648_v28 = vpop.permute.xlu1 %647  ;;  %v650_v29 = vpop.permute.xlu0 %649  ;;  %2177 = vmatprep.mubr.msk.f32.mxu0 %vm71_vm0, %v687_v22 }
 0x1e3   :  { %v688_v31 = vmul.f32 %v648_v28, %v568_v23  ;;  %v689_v30 = vmul.f32 %v650_v29, %v572_v25  ;;  %v914_v25 = vld [vmem:[%s3132_s2 + $0x20] sm:$0xff] }
 0x1e5   :  { %2178 = vmatmul.mubr.msk.f32.gmra.mrb[12].mxu0 %vm71_vm0, %v688_v31 }
 0x1e6   :  { %v652_v37 = vpop.permute.xlu1 %651  ;;  %v654_v38 = vpop.permute.xlu0 %653  ;;  %2180 = vmatprep.mubr.msk.f32.mxu0 %vm71_vm0, %v689_v30 }
 0x1e7   :  { %v690_v39 = vmul.f32 %v652_v37, %v576_v32  ;;  %v691_v40 = vmul.f32 %v654_v38, %v580_v33  ;;  %v917_v37 = vld [vmem:[%s3132_s2 + $0x38] sm:$0xff] }
 0x1e9   :  { %2181 = vmatmul.mubr.msk.f32.gmra.mrb[14].mxu0 %vm71_vm0, %v690_v39 }
 0x1ea   :  { %v656_v45 = vpop.permute.xlu1 %655  ;;  %v658_v48 = vpop.permute.xlu0 %657  ;;  %2183 = vmatprep.mubr.msk.f32.mxu0 %vm71_vm0, %v691_v40 }
 0x1eb   :  { %v692_v49 = vmul.f32 %v656_v45, %v584_v41  ;;  %v693_v51 = vmul.f32 %v658_v48, %v588_v42 }
 0x1ed   :  { %2184 = vmatmul.mubr.msk.f32.gmra.mrb[16].mxu0 %vm71_vm0, %v692_v49 }
 0x1ee   :  { %v660_v55 = vpop.permute.xlu1 %659  ;;  %v662_v56 = vpop.permute.xlu0 %661  ;;  %2186 = vmatprep.mubr.msk.f32.mxu0 %vm71_vm0, %v693_v51 }
 0x1ef   :  { %v694_v57 = vmul.f32 %v660_v55, %v592_v52  ;;  %v695_v47 = vmul.f32 %v662_v56, %v596_v53 }
 0x1f1   :  { %2187 = vmatmul.mubr.msk.f32.gmra.mrb[18].mxu0 %vm71_vm0, %v694_v57 }
 0x1f2   :  { %v664_v59 = vpop.permute.xlu1 %663  ;;  %2189 = vmatprep.mubr.msk.f32.mxu0 %vm71_vm0, %v695_v47  ;;  %v916_v47 = vld [vmem:[%s3132_s2 + $0x30] sm:$0xff] }
 0x1f3   :  { %v696_v60 = vmul.f32 %v664_v59, %v600_v58 }
 0x1f5   :  { %2190 = vmatmul.mubr.msk.f32.gmra.mrb[20].mxu0 %vm71_vm0, %v696_v60 }
 0x2ac   :  { %v2170_v62 = vpop.f32.mrb[6].mxu0 }
 0x2ad   :  { %v895_v0 = vmul.f32 0.35355338, %v2170_v62  ;;  %v815_v1 = vpop.f32.mrb[7].mxu0 }
 0x2ae   :  { %v894_v3 = vmul.f32 0.35355338, %v815_v1 }
 0x2af   :  { %v2714_v4 = vadd.f32 %v911_v63, %v895_v0 }
 0x2b0   :  { %v2716_v5 = vadd.f32 %v910_v2, %v894_v3  ;;  %v2173_v6 = vpop.f32.mrb[8].mxu0 }
 0x2b1   :  { %v950_v8 = vsel %vm942_vm2, %v2714_v4, -inf  ;;  %v897_v9 = vmul.f32 0.35355338, %v2173_v6  ;;  %v825_v10 = vpop.f32.mrb[9].mxu0 }
 0x2b2   :  { %v951_v12 = vrot.slane %v950_v8, 4  ;;  %v943_v13 = vsel %vm942_vm2, %v2716_v5, -inf  ;;  %v896_v14 = vmul.f32 0.35355338, %v825_v10 }
 0x2b3   :  { %v944_v15 = vrot.slane %v943_v13, 4  ;;  %v2728_v16 = vadd.f32 %v913_v7, %v897_v9 }
 0x2b4   :  { %v952_v17 = vmax.f32 %v950_v8, %v951_v12  ;;  %v2730_v18 = vadd.f32 %v912_v11, %v896_v14  ;;  %v2176_v19 = vpop.f32.mrb[10].mxu0 }
 0x2b5   :  { %v945_v21 = vmax.f32 %v943_v13, %v944_v15  ;;  %v964_v22 = vsel %vm942_vm2, %v2728_v16, -inf  ;;  %v899_v24 = vmul.f32 0.35355338, %v2176_v19  ;;  %v835_v23 = vpop.f32.mrb[11].mxu0 }
 0x2b6   :  { %v953_v26 = vrot.slane %v952_v17, 2  ;;  %v965_v27 = vrot.slane %v964_v22, 4  ;;  %v957_v28 = vsel %vm942_vm2, %v2730_v18, -inf  ;;  %v898_v29 = vmul.f32 0.35355338, %v835_v23 }
 0x2b7   :  { %v946_v31 = vrot.slane %v945_v21, 2  ;;  %v958_v30 = vrot.slane %v957_v28, 4  ;;  %v2742_v32 = vadd.f32 %v915_v20, %v899_v24 }
 0x2b8   :  { %v954_v33 = vmax.f32 %v952_v17, %v953_v26  ;;  %v966_v34 = vmax.f32 %v964_v22, %v965_v27  ;;  %v2744_v35 = vadd.f32 %v914_v25, %v898_v29  ;;  %v2179_v36 = vpop.f32.mrb[12].mxu0  ;;  %v919_v26 = vld [vmem:[%s3132_s2 + $0x48] sm:$0xff] }
 0x2b9   :  { %v947_v38 = vmax.f32 %v945_v21, %v946_v31  ;;  %v959_v39 = vmax.f32 %v957_v28, %v958_v30  ;;  %v978_v40 = vsel %vm942_vm2, %v2742_v32, -inf  ;;  %v901_v41 = vmul.f32 0.35355338, %v2179_v36  ;;  %v845_v42 = vpop.f32.mrb[13].mxu0  ;;  %v918_v30 = vld [vmem:[%s3132_s2 + $0x40] sm:$0xff] }
 0x2ba   :  { %v955_v43 = vrot.slane %v954_v33, 1  ;;  %v967_v44 = vrot.slane %v966_v34, 2  ;;  %v979_v45 = vrot.slane %v978_v40, 4  ;;  %v971_v48 = vsel %vm942_vm2, %v2744_v35, -inf }
 0x2bb   :  { %v948_v49 = vrot.slane %v947_v38, 1  ;;  %v960_v51 = vrot.slane %v959_v39, 2  ;;  %v972_v52 = vrot.slane %v971_v48, 4  ;;  %v2753_v53 = vadd.f32 %v917_v37, %v901_v41 }
 0x2bc   :  { %v956_v54 = vmax.f32 %v954_v33, %v955_v43  ;;  %v968_v55 = vmax.f32 %v966_v34, %v967_v44  ;;  %v980_v56 = vmax.f32 %v978_v40, %v979_v45  ;;  %v900_v57 = vmul.f32 0.35355338, %v845_v42  ;;  %v2182_v58 = vpop.f32.mrb[14].mxu0  ;;  %v921_v44 = vld [vmem:[%s3132_s2 + $0x58] sm:$0xff] }
 0x2bd   :  { %v949_v59 = vmax.f32 %v947_v38, %v948_v49  ;;  %v961_v60 = vmax.f32 %v959_v39, %v960_v51  ;;  %v973_v61 = vmax.f32 %v971_v48, %v972_v52  ;;  %v992_v62 = vsel %vm942_vm2, %v2753_v53, -inf  ;;  %v855_v63 = vpop.f32.mrb[15].mxu0 }
 0x2be   :  { %v1056_v0 = vsub.f32 %v2714_v4, %v956_v54  ;;  %v969_v1 = vrot.slane %v968_v55, 1  ;;  %v981_v2 = vrot.slane %v980_v56, 2  ;;  %v993_v3 = vrot.slane %v992_v62, 4 }
 0x2bf   :  { %v1055_v6 = vsub.f32 %v2716_v5, %v949_v59  ;;  %v962_v7 = vrot.slane %v961_v60, 1  ;;  %v974_v8 = vrot.slane %v973_v61, 2  ;;  %v2762_v9 = vadd.f32 %v916_v47, %v900_v57 }
 0x2c0   :  { %v1073_v10 = vmul.f32 1.442695, %v1056_v0  ;;  %v970_v11 = vmax.f32 %v968_v55, %v969_v1  ;;  %v982_v12 = vmax.f32 %v980_v56, %v981_v2  ;;  %v994_v13 = vmax.f32 %v992_v62, %v993_v3  ;;  %v2185_v14 = vpop.f32.mrb[16].mxu0 }
 0x2c1   :  { %v1071_v15 = vmul.f32 1.442695, %v1055_v6  ;;  %v963_v17 = vmax.f32 %v961_v60, %v962_v7  ;;  %v975_v19 = vmax.f32 %v973_v61, %v974_v8  ;;  %v985_v4 = vsel %vm942_vm2, %v2762_v9, -inf  ;;  %v865_v20 = vpop.f32.mrb[17].mxu0  ;;  %v920_v8 = vld [vmem:[%s3132_s2 + $0x50] sm:$0xff] }
 0x2c2   :  { %2275 = vpow2.f32 %v1073_v10  ;;  %v1058_v21 = vsub.f32 %v2728_v16, %v970_v11  ;;  %v983_v5 = vrot.slane %v982_v12, 1  ;;  %v995_v22 = vrot.slane %v994_v13, 2 }
 0x2c3   :  { %2277 = vpow2.f32 %v1071_v15  ;;  %v1057_v24 = vsub.f32 %v2730_v18, %v963_v17  ;;  %v976_v23 = vrot.slane %v975_v19, 1  ;;  %v986_v25 = vrot.slane %v985_v4, 4 }
 0x2c4   :  { %v1077_v27 = vmul.f32 1.442695, %v1058_v21  ;;  %v984_v28 = vmax.f32 %v982_v12, %v983_v5  ;;  %v996_v29 = vmax.f32 %v994_v13, %v995_v22  ;;  %v903_v31 = vmul.f32 0.35355338, %v2182_v58  ;;  %v2188_v16 = vpop.f32.mrb[18].mxu0 }
 0x2c5   :  { %v1075_v33 = vmul.f32 1.442695, %v1057_v24  ;;  %v977_v34 = vmax.f32 %v975_v19, %v976_v23  ;;  %v987_v36 = vmax.f32 %v985_v4, %v986_v25  ;;  %v902_v37 = vmul.f32 0.35355338, %v855_v63  ;;  %v2774_v18 = vpop.f32.mrb[19].mxu0 }
 0x2c6   :  { %2279 = vpow2.f32 %v1077_v27  ;;  %v1060_v38 = vsub.f32 %v2742_v32, %v984_v28  ;;  %v997_v39 = vrot.slane %v996_v29, 1  ;;  %v2777_v40 = vadd.f32 %v919_v26, %v903_v31  ;;  %v923_v31 = vld [vmem:[%s3132_s2 + $0x68] sm:$0xff] }
 0x2c7   :  { %2281 = vpow2.f32 %v1075_v33  ;;  %v1059_v41 = vsub.f32 %v2744_v35, %v977_v34  ;;  %v988_v42 = vrot.slane %v987_v36, 2  ;;  %v2780_v43 = vadd.f32 %v918_v30, %v902_v37 }
 0x2c8   :  { %v1081_v45 = vmul.f32 1.442695, %v1060_v38  ;;  %v998_v48 = vmax.f32 %v996_v29, %v997_v39  ;;  %v1006_v49 = vsel %vm942_vm2, %v2777_v40, -inf  ;;  %v905_v51 = vmul.f32 0.35355338, %v2185_v14  ;;  %v2787_v32 = vpop.f32.mrb[20].mxu0 }
 0x2c9   :  { %v1079_v52 = vmul.f32 1.442695, %v1059_v41  ;;  %v989_v54 = vmax.f32 %v987_v36, %v988_v42  ;;  %v1007_v55 = vrot.slane %v1006_v49, 4  ;;  %v999_v35 = vsel %vm942_vm2, %v2780_v43, -inf  ;;  %v2791_v56 = vpop.f32.mrb[21].mxu0 }
 0x2ca   :  { %2283 = vpow2.f32 %v1081_v45  ;;  %v1062_v57 = vsub.f32 %v2753_v53, %v998_v48  ;;  %v1000_v47 = vrot.slane %v999_v35, 4  ;;  %v2794_v58 = vadd.f32 %v921_v44, %v905_v51 }
 0x2cb   :  { %2285 = vpow2.f32 %v1079_v52  ;;  %v990_v59 = vrot.slane %v989_v54, 1  ;;  %v1008_v60 = vmax.f32 %v1006_v49, %v1007_v55  ;;  %v904_v1 = vmul.f32 0.35355338, %v865_v20 }
 0x2cc   :  { %v2796_v61 = vpop.eup %2275  ;;  %v1085_v62 = vmul.f32 1.442695, %v1062_v57  ;;  %v1001_v63 = vmax.f32 %v999_v35, %v1000_v47  ;;  %v1020_v0 = vsel %vm942_vm2, %v2794_v58, -inf  ;;  %v907_v17 = vmul.f32 0.35355338, %v2188_v16 }
 0x2cd   :  { %v2800_v2 = vpop.eup %2277  ;;  %v1110_v3 = vsel %vm942_vm2, %v2796_v61, 0.0  ;;  %v991_v53 = vmax.f32 %v989_v54, %v990_v59  ;;  %v1009_v6 = vrot.slane %v1008_v60, 2  ;;  %v1021_v7 = vrot.slane %v1020_v0, 4 }
 0x2ce   :  { %v1111_v10 = vrot.slane %v1110_v3, 4  ;;  %v1103_v11 = vsel %vm942_vm2, %v2800_v2, 0.0  ;;  %2287 = vpow2.f32 %v1085_v62  ;;  %v1002_v12 = vrot.slane %v1001_v63, 2 }
 0x2cf   :  { %v1104_v13 = vrot.slane %v1103_v11, 4  ;;  %v1061_v14 = vsub.f32 %v2762_v9, %v991_v53  ;;  %v1010_v15 = vmax.f32 %v1008_v60, %v1009_v6  ;;  %v1022_v21 = vmax.f32 %v1020_v0, %v1021_v7 }
 0x2d0   :  { %v2810_v19 = vpop.eup %2279  ;;  %v1112_v4 = vadd.f32 %v1111_v10, %v1110_v3  ;;  %v1003_v20 = vmax.f32 %v1001_v63, %v1002_v12  ;;  %v2812_v5 = vadd.f32 %v920_v8, %v904_v1  ;;  %v2830_v48 = vadd.f32 %v923_v31, %v907_v17 }
 0x2d1   :  { %v2814_v22 = vpop.eup %2281  ;;  %v1105_v24 = vadd.f32 %v1104_v13, %v1103_v11  ;;  %v1124_v23 = vsel %vm942_vm2, %v2810_v19, 0.0  ;;  %v1083_v25 = vmul.f32 1.442695, %v1061_v14  ;;  %v1011_v26 = vrot.slane %v1010_v15, 1 }
 0x2d2   :  { %v1113_v27 = vrot.slane %v1112_v4, 2  ;;  %v1125_v28 = vrot.slane %v1124_v23, 4  ;;  %v1117_v9 = vsel %vm942_vm2, %v2814_v22, 0.0  ;;  %v1004_v29 = vrot.slane %v1003_v20, 1 }
 0x2d3   :  { %v1106_v30 = vrot.slane %v1105_v24, 2  ;;  %v1118_v16 = vrot.slane %v1117_v9, 4  ;;  %2289 = vpow2.f32 %v1083_v25  ;;  %v1012_v33 = vmax.f32 %v1010_v15, %v1011_v26  ;;  %v922_v15 = vld [vmem:[%s3132_s2 + $0x60] sm:$0xff] }
 0x2d4   :  { %v2823_v34 = vpop.eup %2283  ;;  %v1114_v36 = vadd.f32 %v1113_v27, %v1112_v4  ;;  %v1126_v37 = vadd.f32 %v1125_v28, %v1124_v23  ;;  %v1005_v38 = vmax.f32 %v1003_v20, %v1004_v29  ;;  %v1023_v39 = vrot.slane %v1022_v21, 2  ;;  %v925_v23 = vld [vmem:[%s3132_s2 + $0x78] sm:$0xff] }
 0x2d5   :  { %v2825_v41 = vpop.eup %2285  ;;  %v1119_v42 = vadd.f32 %v1118_v16, %v1117_v9  ;;  %v1138_v44 = vsel %vm942_vm2, %v2823_v34, 0.0  ;;  %v1064_v45 = vsub.f32 %v2777_v40, %v1012_v33  ;;  %v2834_v55 = vadd.f32 %v1106_v30, %v1105_v24 }
 0x2d6   :  { %v1115_v49 = vrot.slane %v1114_v36, 1  ;;  %v1127_v51 = vrot.slane %v1126_v37, 2  ;;  %v1139_v52 = vrot.slane %v1138_v44, 4  ;;  %v1131_v54 = vsel %vm942_vm2, %v2825_v41, 0.0 }
 0x2d7   :  { %v1132_v35 = vrot.slane %v1131_v54, 4  ;;  %v1089_v57 = vmul.f32 1.442695, %v1064_v45  ;;  %v1063_v47 = vsub.f32 %v2780_v43, %v1005_v38  ;;  %v1120_v62 = vrot.slane %v1119_v42, 2 }
 0x2d8   :  { %v2837_v59 = vpop.eup %2287  ;;  %v1116_v60 = vadd.f32 %v1115_v49, %v1114_v36  ;;  %v1140_v63 = vadd.f32 %v1139_v52, %v1138_v44  ;;  %v1024_v40 = vmax.f32 %v1022_v21, %v1023_v39  ;;  %v2839_v0 = vadd.f32 %v1127_v51, %v1126_v37 }
 0x2d9   :  { %v1133_v1 = vadd.f32 %v1132_v35, %v1131_v54  ;;  %v1152_v3 = vsel %vm942_vm2, %v2837_v59, 0.0  ;;  %2291 = vpow2.f32 %v1089_v57  ;;  %v1087_v7 = vmul.f32 1.442695, %v1063_v47 }
 0x2da   :  { %2293 = vrcp.f32 %v1116_v60  ;;  %v1141_v53 = vrot.slane %v1140_v63, 2  ;;  %v1153_v6 = vrot.slane %v1152_v3, 4  ;;  %v1025_v10 = vrot.slane %v1024_v40, 1 }
 0x2db   :  { %v1134_v8 = vrot.slane %v1133_v1, 2  ;;  %v1013_v43 = vsel %vm942_vm2, %v2812_v5, -inf  ;;  %v1034_v11 = vsel %vm942_vm2, %v2830_v48, -inf  ;;  %v2847_v12 = vadd.f32 %v1120_v62, %v1119_v42 }
 0x2dc   :  { %v1154_v13 = vadd.f32 %v1153_v6, %v1152_v3  ;;  %2295 = vpow2.f32 %v1087_v7  ;;  %v1014_v14 = vrot.slane %v1013_v43, 4  ;;  %v2854_v4 = vadd.f32 %v1141_v53, %v1140_v63 }
 0x2dd   :  { %v2852_v17 = vpop.eup %2289  ;;  %v1026_v20 = vmax.f32 %v1024_v40, %v1025_v10  ;;  %v1035_v21 = vrot.slane %v1034_v11, 4  ;;  %v906_v24 = vmul.f32 0.35355338, %v2774_v18  ;;  %v2860_v25 = vadd.f32 %v1134_v8, %v1133_v1  ;;  %v924_v18 = vld [vmem:[%s3132_s2 + $0x70] sm:$0xff] }
 0x2de   :  { %v1145_v26 = vsel %vm942_vm2, %v2852_v17, 0.0  ;;  %v1015_v27 = vmax.f32 %v1013_v43, %v1014_v14  ;;  %v909_v28 = vmul.f32 0.35355338, %v2787_v32  ;;  %v1155_v16 = vrot.slane %v1154_v13, 2 }
 0x2df   :  { %v1146_v9 = vrot.slane %v1145_v26, 4  ;;  %v1066_v29 = vsub.f32 %v2794_v58, %v1026_v20  ;;  %v1036_v31 = vmax.f32 %v1034_v11, %v1035_v21  ;;  %v2866_v30 = vadd.f32 %v922_v15, %v906_v24 }
 0x2e0   :  { %v1016_v33 = vrot.slane %v1015_v27, 2  ;;  %v2871_v36 = vadd.f32 %v925_v23, %v909_v28  ;;  %v908_v37 = vmul.f32 0.35355338, %v2791_v56  ;;  %v2888_v63 = vadd.f32 %v1155_v16, %v1154_v13 }
 0x2e1   :  { %v1147_v38 = vadd.f32 %v1146_v9, %v1145_v26  ;;  %v1093_v39 = vmul.f32 1.442695, %v1066_v29  ;;  %v1037_v42 = vrot.slane %v1036_v31, 2  ;;  %v1027_v32 = vsel %vm942_vm2, %v2866_v30, -inf }
 0x2e2   :  { %v1017_v58 = vmax.f32 %v1015_v27, %v1016_v33  ;;  %v1028_v44 = vrot.slane %v1027_v32, 4  ;;  %v1048_v45 = vsel %vm942_vm2, %v2871_v36, -inf  ;;  %v2878_v49 = vadd.f32 %v924_v18, %v908_v37 }
 0x2e3   :  { %v2880_v51 = vpop.eup %2291  ;;  %v1148_v52 = vrot.slane %v1147_v38, 2  ;;  %2297 = vpow2.f32 %v1093_v39  ;;  %v1038_v54 = vmax.f32 %v1036_v31, %v1037_v42  ;;  %v1049_v35 = vrot.slane %v1048_v45, 4 }
 0x2e4   :  { %v2882_v56 = vpop.eup %2293  ;;  %v1166_v57 = vsel %vm942_vm2, %v2880_v51, 0.0  ;;  %v1018_v47 = vrot.slane %v1017_v58, 1  ;;  %v1029_v60 = vmax.f32 %v1027_v32, %v1028_v44  ;;  %v1041_v62 = vsel %vm942_vm2, %v2878_v49, -inf }
 0x2e5   :  { %v1149_v40 = vadd.f32 %v1148_v52, %v1147_v38  ;;  %v1167_v1 = vrot.slane %v1166_v57, 4  ;;  %v1039_v3 = vrot.slane %v1038_v54, 1  ;;  %v1050_v8 = vmax.f32 %v1048_v45, %v1049_v35 }
 0x2e6   :  { %v2890_v53 = vpop.eup %2295  ;;  %v1019_v6 = vmax.f32 %v1017_v58, %v1018_v47  ;;  %v1030_v7 = vrot.slane %v1029_v60, 2  ;;  %v1042_v10 = vrot.slane %v1041_v62, 4  ;;  %v1108_v15 = vrot.slane %v2834_v55, 1 }
 0x2e7   :  { %v1168_v43 = vadd.f32 %v1167_v1, %v1166_v57  ;;  %v1159_v11 = vsel %vm942_vm2, %v2890_v53, 0.0  ;;  %v1040_v14 = vmax.f32 %v1038_v54, %v1039_v3  ;;  %v1051_v24 = vrot.slane %v1050_v8, 2 }
 0x2e8   :  { %v1160_v20 = vrot.slane %v1159_v11, 4  ;;  %v1065_v13 = vsub.f32 %v2812_v5, %v1019_v6  ;;  %v1031_v21 = vmax.f32 %v1029_v60, %v1030_v7  ;;  %v1043_v27 = vmax.f32 %v1041_v62, %v1042_v10 }
 0x2e9   :  { %v1169_v23 = vrot.slane %v1168_v43, 2  ;;  %v1068_v26 = vsub.f32 %v2830_v48, %v1040_v14  ;;  %v1109_v28 = vadd.f32 %v1108_v15, %v2834_v55  ;;  %v1052_v18 = vmax.f32 %v1050_v8, %v1051_v24 }
 0x2ea   :  { %v1161_v9 = vadd.f32 %v1160_v20, %v1159_v11  ;;  %v1091_v29 = vmul.f32 1.442695, %v1065_v13  ;;  %v1032_v31 = vrot.slane %v1031_v21, 1  ;;  %v1044_v37 = vrot.slane %v1043_v27, 2 }
 0x2eb   :  { %v1170_v16 = vadd.f32 %v1169_v23, %v1168_v43  ;;  %v1097_v33 = vmul.f32 1.442695, %v1068_v26  ;;  %2299 = vrcp.f32 %v1109_v28  ;;  %v1053_v5 = vrot.slane %v1052_v18, 1 }
 0x2ec   :  { %v1162_v38 = vrot.slane %v1161_v9, 2  ;;  %2301 = vpow2.f32 %v1091_v29  ;;  %v1033_v39 = vmax.f32 %v1031_v21, %v1032_v31  ;;  %v1045_v32 = vmax.f32 %v1043_v27, %v1044_v37 }
 0x2ed   :  { %v2898_v42 = vpop.eup %2297  ;;  %2303 = vpow2.f32 %v1097_v33  ;;  %v1122_v48 = vrot.slane %v2847_v12, 1  ;;  %v1129_v55 = vrot.slane %v2839_v0, 1  ;;  %v1054_v52 = vmax.f32 %v1052_v18, %v1053_v5 }
 0x2ee   :  { %v1163_v58 = vadd.f32 %v1162_v38, %v1161_v9  ;;  %v1180_v44 = vsel %vm942_vm2, %v2898_v42, 0.0  ;;  %v1067_v45 = vsub.f32 %v2866_v30, %v1033_v39  ;;  %v1046_v35 = vrot.slane %v1045_v32, 1 }
 0x2ef   :  { %v1181_v54 = vrot.slane %v1180_v44, 4  ;;  %v1123_v57 = vadd.f32 %v1122_v48, %v2847_v12  ;;  %v1130_v47 = vadd.f32 %v1129_v55, %v2839_v0  ;;  %v1070_v62 = vsub.f32 %v2871_v36, %v1054_v52 }
 0x2f0   :  { %v1095_v60 = vmul.f32 1.442695, %v1067_v45  ;;  %v1136_v1 = vrot.slane %v2860_v25, 1  ;;  %v1143_v3 = vrot.slane %v2854_v4, 1  ;;  %v1047_v7 = vmax.f32 %v1045_v32, %v1046_v35 }
 0x2f1   :  { %v1182_v6 = vadd.f32 %v1181_v54, %v1180_v44  ;;  %2305 = vrcp.f32 %v1123_v57  ;;  %v1150_v8 = vrot.slane %v1149_v40, 1  ;;  %v1101_v30 = vmul.f32 1.442695, %v1070_v62 }
 0x2f2   :  { %2307 = vpow2.f32 %v1095_v60  ;;  %v1137_v10 = vadd.f32 %v1136_v1, %v2860_v25  ;;  %v1144_v43 = vadd.f32 %v1143_v3, %v2854_v4  ;;  %v1069_v0 = vsub.f32 %v2878_v49, %v1047_v7 }
 0x2f3   :  { %v1183_v12 = vrot.slane %v1182_v6, 2  ;;  %2309 = vrcp.f32 %v1130_v47  ;;  %v1151_v36 = vadd.f32 %v1150_v8, %v1149_v40  ;;  %v1157_v11 = vrot.slane %v2888_v63, 1 }
 0x2f4   :  { %2311 = vpow2.f32 %v1101_v30  ;;  %v1164_v14 = vrot.slane %v1163_v58, 1  ;;  %v1099_v20 = vmul.f32 1.442695, %v1069_v0  ;;  %v1171_v13 = vrot.slane %v1170_v16, 1 }
 0x2f5   :  { %v2300_v15 = vpop.eup %2299  ;;  %2313 = vrcp.f32 %v1137_v10  ;;  %v1158_v4 = vadd.f32 %v1157_v11, %v2888_v63  ;;  %v1218_v49 = vmul.f32 %v2882_v56, %v2796_v61  ;;  %v1184_v40 = vadd.f32 %v1183_v12, %v1182_v6 }
 0x2f6   :  { %v2914_v21 = vpop.eup %2301  ;;  %v1216_v24 = vmul.f32 %v2300_v15, %v2800_v2  ;;  %2315 = vrcp.f32 %v1144_v43  ;;  %v1165_v25 = vadd.f32 %v1164_v14, %v1163_v58  ;;  %v1172_v63 = vadd.f32 %v1171_v13, %v1170_v16 }
 0x2f7   :  { %v2918_v23 = vpop.eup %2303  ;;  %v1173_v26 = vsel %vm942_vm2, %v2914_v21, 0.0  ;;  %2317 = vpow2.f32 %v1099_v20  ;;  %v1185_v29 = vrot.slane %v1184_v40, 1 }
 0x2f8   :  { %v1174_v27 = vrot.slane %v1173_v26, 4  ;;  %v1194_v28 = vsel %vm942_vm2, %v2918_v23, 0.0  ;;  %2194 = vmatprep.mubr.msk.f32.mxu1 %vm942_vm2, %v1216_v24  ;;  %2319 = vrcp.f32 %v1151_v36 }
 0x2f9   :  { %v1195_v2 = vrot.slane %v1194_v28, 4  ;;  %2195 = vmatmul.mubr.msk.f32.vlgmr.msra.gmra.mrb[12].mxu1 %vm942_vm2, %v1218_v49  ;;  %2321 = vrcp.f32 %v1158_v4 }
 0x2fa   :  { %v1175_v9 = vadd.f32 %v1174_v27, %v1173_v26  ;;  %2323 = vrcp.f32 %v1165_v25 }
 0x2fb   :  { %v2306_v61 = vpop.eup %2305  ;;  %v1196_v56 = vadd.f32 %v1195_v2, %v1194_v28  ;;  %2325 = vrcp.f32 %v1172_v63 }
 0x2fc   :  { %v2928_v31 = vpop.eup %2307  ;;  %v1176_v18 = vrot.slane %v1175_v9, 2  ;;  %v1220_v33 = vmul.f32 %v2306_v61, %v2814_v22  ;;  %v1186_v22 = vadd.f32 %v1185_v29, %v1184_v40 }
 0x2fd   :  { %v2310_v37 = vpop.eup %2309  ;;  %v1197_v38 = vrot.slane %v1196_v56, 2  ;;  %v1187_v39 = vsel %vm942_vm2, %v2928_v31, 0.0 }
 0x2fe   :  { %v2933_v5 = vpop.eup %2311  ;;  %v1177_v32 = vadd.f32 %v1176_v18, %v1175_v9  ;;  %v1188_v16 = vrot.slane %v1187_v39, 4  ;;  %2197 = vmatprep.mubr.msk.f32.mxu1 %vm942_vm2, %v1220_v33  ;;  %v1222_v48 = vmul.f32 %v2310_v37, %v2810_v19  ;;  %2327 = vrcp.f32 %v1186_v22  ;;  %v1623_v18 = vld [vmem:[%s3137_s7 + $0x10] sm:$0xff]  ;;  %v1624_v33 = vld [vmem:[%s3137_s7 + $0x18] sm:$0xff] }
 0x2ff   :  { %v2314_v55 = vpop.eup %2313  ;;  %v1198_v58 = vadd.f32 %v1197_v38, %v1196_v56  ;;  %v1208_v44 = vsel %vm942_vm2, %v2933_v5, 0.0  ;;  %v2257_v37 = vpack.c.bf16 %v1624_v33, %v1623_v18  ;;  %v1448_v38 = vpop.permute.xlu1 %1447 }
 0x300   :  { %v2316_v45 = vpop.eup %2315  ;;  %v1189_v52 = vadd.f32 %v1188_v16, %v1187_v39  ;;  %v1209_v54 = vrot.slane %v1208_v44, 4  ;;  %2198 = vmatmul.mubr.msk.f32.gmra.mrb[14].mxu1 %vm942_vm2, %v1222_v48  ;;  %v1224_v35 = vmul.f32 %v2314_v55, %v2825_v41  ;;  %v1178_v57 = vrot.slane %v1177_v32, 1 }
 0x301   :  { %v2318_v47 = vpop.eup %2317  ;;  %v1226_v60 = vmul.f32 %v2316_v45, %v2823_v34  ;;  %v1199_v62 = vrot.slane %v1198_v58, 1 }
 0x302   :  { %v2320_v1 = vpop.eup %2319  ;;  %v1190_v19 = vrot.slane %v1189_v52, 2  ;;  %v1210_v3 = vadd.f32 %v1209_v54, %v1208_v44  ;;  %v1201_v6 = vsel %vm942_vm2, %v2318_v47, 0.0  ;;  %2200 = vmatprep.mubr.msk.f32.mxu1 %vm942_vm2, %v1224_v35  ;;  %v1179_v7 = vadd.f32 %v1178_v57, %v1177_v32  ;;  %v1446_v32 = vpop.permute.xlu0 %1445 }
 0x303   :  { %v2322_v8 = vpop.eup %2321  ;;  %v1202_v30 = vrot.slane %v1201_v6, 4  ;;  %v1228_v10 = vmul.f32 %v2320_v1, %v2852_v17  ;;  %v1200_v36 = vadd.f32 %v1199_v62, %v1198_v58  ;;  %v2976_v39 = vpop.permute.xlu1 %1461 }
 0x304   :  { %v2324_v43 = vpop.eup %2323  ;;  %v1191_v41 = vadd.f32 %v1190_v19, %v1189_v52  ;;  %v1211_v12 = vrot.slane %v1210_v3, 2  ;;  %2201 = vmatmul.mubr.msk.f32.gmra.mrb[16].mxu1 %vm942_vm2, %v1226_v60  ;;  %2329 = vrcp.f32 %v1179_v7  ;;  %v1230_v14 = vmul.f32 %v2322_v8, %v2837_v59 }
 0x305   :  { %v1203_v34 = vadd.f32 %v1202_v30, %v1201_v6  ;;  %2203 = vmatprep.mubr.msk.f32.mxu1 %vm942_vm2, %v1228_v10  ;;  %v1232_v0 = vmul.f32 %v2324_v43, %v2890_v53  ;;  %v2326_v20 = vpop.eup %2325  ;;  %2331 = vrcp.f32 %v1200_v36 }
 0x306   :  { %v1212_v11 = vadd.f32 %v1211_v12, %v1210_v3  ;;  %v1192_v15 = vrot.slane %v1191_v41, 1  ;;  %v1234_v25 = vmul.f32 %v2326_v20, %v2880_v51  ;;  %v1450_v55 = vpop.permute.xlu0 %1449 }
 0x307   :  { %v1204_v13 = vrot.slane %v1203_v34, 2 }
 0x308   :  { %2204 = vmatmul.mubr.msk.f32.gmra.mrb[18].mxu1 %vm942_vm2, %v1230_v14  ;;  %v1193_v17 = vadd.f32 %v1192_v15, %v1191_v41  ;;  %v1213_v24 = vrot.slane %v1212_v11, 1  ;;  %v2328_v40 = vpop.eup %2327 }
 0x309   :  { %v1205_v4 = vadd.f32 %v1204_v13, %v1203_v34  ;;  %2206 = vmatprep.mubr.msk.f32.mxu1 %vm942_vm2, %v1232_v0  ;;  %v1238_v28 = vmul.f32 %v2328_v40, %v2898_v42  ;;  %v1621_v42 = vld [vmem:[%s3137_s7] sm:$0xff] }
 0x30a   :  { %2333 = vrcp.f32 %v1193_v17  ;;  %v1214_v49 = vadd.f32 %v1213_v24, %v1212_v11  ;;  %v1464_v60 = vpop.permute.xlu0 %1463 }
 0x30b   :  { %v1206_v53 = vrot.slane %v1205_v4, 1 }
 0x30c   :  { %2207 = vmatmul.mubr.msk.f32.gmra.mrb[20].mxu1 %vm942_vm2, %v1234_v25  ;;  %2335 = vrcp.f32 %v1214_v49 }
 0x30d   :  { %v1207_v59 = vadd.f32 %v1206_v53, %v1205_v4 }
 0x30e   :  { %v2330_v26 = vpop.eup %2329  ;;  %v2982_v20 = vpop.permute.xlu0 %1465 }
 0x30f   :  { %v1236_v27 = vmul.f32 %v2330_v26, %v2914_v21  ;;  %2337 = vrcp.f32 %v1207_v59  ;;  %v2332_v2 = vpop.eup %2331 }
 0x310   :  { %v1242_v9 = vmul.f32 %v2332_v2, %v2918_v23  ;;  %v1622_v23 = vld [vmem:[%s3137_s7 + $0x8] sm:$0xff] }
 0x311   :  { %2209 = vmatprep.mubr.msk.f32.mxu1 %vm942_vm2, %v1236_v27 }
 0x312   :  { %2210 = vmatmul.mubr.msk.f32.gmra.mrb[22].mxu1 %vm942_vm2, %v1238_v28  ;;  %v1468_v18 = vpop.permute.xlu0 %1467 }
 0x314   :  { %v2334_v51 = vpop.eup %2333 }
 0x315   :  { %v1240_v63 = vmul.f32 %v2334_v51, %v2928_v31  ;;  %v2253_v31 = vpack.c.bf16 %v1622_v23, %v1621_v42 }
 0x316   :  { %v2336_v61 = vpop.eup %2335 }
 0x317   :  { %2212 = vmatprep.mubr.msk.f32.mxu1 %vm942_vm2, %v1240_v63  ;;  %v1246_v29 = vmul.f32 %v2336_v61, %v2933_v5  ;;  %2254 = vmatprep.subr.bf16.mxu0 %v2253_v31  ;;  %v1452_v5 = vpop.permute.xlu1 %1451 }
 0x318   :  { %2213 = vmatmul.mubr.msk.f32.gmra.mrb[24].mxu1 %vm942_vm2, %v1242_v9  ;;  %2256 = vmatpush3.bf16.msra.mxu0 %v2253_v31 }
 0x319   :  { %v2338_v56 = vpop.eup %2337  ;;  %2258 = vmatprep.subr.bf16.mxu0 %v2257_v37 }
 0x31a   :  { %v1244_v21 = vmul.f32 %v2338_v56, %v2318_v47 }
 0x31b   :  { %v1454_v16 = vpop.permute.xlu1 %1453 }
 0x31c   :  { %2215 = vmatprep.mubr.msk.f32.mxu1 %vm942_vm2, %v1244_v21  ;;  %2260 = vmatpush3.bf16.msra.mxu0 %v2257_v37 }
 0x31d   :  { %2216 = vmatmul.mubr.msk.f32.gmra.mrb[26].mxu1 %vm942_vm2, %v1246_v29 }
 0x31f   :  { %v1456_v45 = vpop.permute.xlu1 %1455 }
 0x323   :  { %v1458_v7 = vpop.permute.xlu1 %1457 }
 0x327   :  { %v1460_v53 = vpop.permute.xlu1 %1459 }
 0x3cc   :  { %v2196_v48 = vpop.f32.mrb[12].mxu1 }
 0x3cd   :  { %v1494_v58 = vmul.f32 %v2196_v48, %v1448_v38  ;;  %v1366_v44 = vpop.f32.mrb[13].mxu1 }
 0x3ce   :  { %v1493_v22 = vmul.f32 %v1446_v32, %v1366_v44 }
 0x3cf   :  { %v1516_v52 = vsel %vm71_vm0, %v1494_v58, 0.0 }
 0x3d0   :  { %v1517_v54 = vrot.slane %v1516_v52, 4  ;;  %v1509_v35 = vsel %vm71_vm0, %v1493_v22, 0.0 }
 0x3d1   :  { %v1510_v57 = vrot.slane %v1509_v35, 4 }
 0x3d2   :  { %v1518_v47 = vadd.f32 %v1517_v54, %v1516_v52 }
 0x3d3   :  { %v1511_v62 = vadd.f32 %v1510_v57, %v1509_v35  ;;  %v2199_v1 = vpop.f32.mrb[14].mxu1 }
 0x3d4   :  { %v1519_v19 = vrot.slane %v1518_v47, 2  ;;  %v1496_v3 = vmul.f32 %v2199_v1, %v1452_v5  ;;  %v1376_v6 = vpop.f32.mrb[15].mxu1 }
 0x3d5   :  { %v1512_v8 = vrot.slane %v1511_v62, 2  ;;  %v1495_v30 = vmul.f32 %v1450_v55, %v1376_v6 }
 0x3d6   :  { %v1520_v10 = vadd.f32 %v1519_v19, %v1518_v47  ;;  %v1530_v43 = vsel %vm71_vm0, %v1496_v3, 0.0 }
 0x3d7   :  { %v1513_v41 = vadd.f32 %v1512_v8, %v1511_v62  ;;  %v1531_v12 = vrot.slane %v1530_v43, 4  ;;  %v1523_v34 = vsel %vm71_vm0, %v1495_v30, 0.0  ;;  %v2202_v0 = vpop.f32.mrb[16].mxu1 }
 0x3d8   :  { %v1521_v36 = vrot.slane %v1520_v10, 1  ;;  %v1524_v11 = vrot.slane %v1523_v34, 4  ;;  %v1498_v14 = vmul.f32 %v2202_v0, %v1456_v45  ;;  %v1386_v15 = vpop.f32.mrb[17].mxu1 }
 0x3d9   :  { %v1514_v13 = vrot.slane %v1513_v41, 1  ;;  %v1532_v17 = vadd.f32 %v1531_v12, %v1530_v43  ;;  %v1497_v24 = vmul.f32 %v1454_v16, %v1386_v15 }
 0x3da   :  { %v1522_v4 = vadd.f32 %v1521_v36, %v1520_v10  ;;  %v1525_v25 = vadd.f32 %v1524_v11, %v1523_v34  ;;  %v1544_v49 = vsel %vm71_vm0, %v1498_v14, 0.0  ;;  %v1470_v10 = vpop.permute.xlu0 %1469 }
 0x3db   :  { %v1515_v40 = vadd.f32 %v1514_v13, %v1513_v41  ;;  %v1533_v59 = vrot.slane %v1532_v17, 2  ;;  %v1545_v26 = vrot.slane %v1544_v49, 4  ;;  %v1537_v27 = vsel %vm71_vm0, %v1497_v24, 0.0  ;;  %v2205_v28 = vpop.f32.mrb[18].mxu1 }
 0x3dc   :  { %v1526_v2 = vrot.slane %v1525_v25, 2  ;;  %v1538_v51 = vrot.slane %v1537_v27, 4  ;;  %v1500_v63 = vmul.f32 %v2205_v28, %v1460_v53  ;;  %v1396_v9 = vpop.f32.mrb[19].mxu1 }
 0x3dd   :  { %v1649_v61 = vsel %vm1648_vm3, %v1522_v4, %v1515_v40  ;;  %v1534_v56 = vadd.f32 %v1533_v59, %v1532_v17  ;;  %v1546_v21 = vadd.f32 %v1545_v26, %v1544_v49  ;;  %v1499_v29 = vmul.f32 %v1458_v7, %v1396_v9 }
 0x3de   :  { %v1527_v42 = vadd.f32 %v1526_v2, %v1525_v25  ;;  %v1539_v23 = vadd.f32 %v1538_v51, %v1537_v27  ;;  %v1558_v31 = vsel %vm71_vm0, %v1500_v63, 0.0  ;;  %v1472_v63 = vpop.permute.xlu0 %1471 }
 0x3df   :  { %v1535_v33 = vrot.slane %v1534_v56, 1  ;;  %v1547_v37 = vrot.slane %v1546_v21, 2  ;;  %v1559_v38 = vrot.slane %v1558_v31, 4  ;;  %v1551_v5 = vsel %vm71_vm0, %v1499_v29, 0.0  ;;  %v2208_v32 = vpop.f32.mrb[20].mxu1 }
 0x3e0   :  { %v1528_v16 = vrot.slane %v1527_v42, 1  ;;  %v1540_v48 = vrot.slane %v1539_v23, 2  ;;  %v1552_v55 = vrot.slane %v1551_v5, 4  ;;  %v1502_v58 = vmul.f32 %v2208_v32, %v1464_v60  ;;  %v1406_v44 = vpop.f32.mrb[21].mxu1 }
 0x3e1   :  { %v1536_v22 = vadd.f32 %v1535_v33, %v1534_v56  ;;  %v1548_v45 = vadd.f32 %v1547_v37, %v1546_v21  ;;  %v1560_v52 = vadd.f32 %v1559_v38, %v1558_v31  ;;  %v1501_v54 = vmul.f32 %v2976_v39, %v1406_v44  ;;  %v1476_v44 = vpop.permute.xlu1 %1475 }
 0x3e2   :  { %v1529_v35 = vadd.f32 %v1528_v16, %v1527_v42  ;;  %v1541_v57 = vadd.f32 %v1540_v48, %v1539_v23  ;;  %v1553_v47 = vadd.f32 %v1552_v55, %v1551_v5  ;;  %v1572_v62 = vsel %vm71_vm0, %v1502_v58, 0.0 }
 0x3e3   :  { %v1549_v1 = vrot.slane %v1548_v45, 1  ;;  %v1561_v19 = vrot.slane %v1560_v52, 2  ;;  %v1573_v3 = vrot.slane %v1572_v62, 4  ;;  %v1565_v6 = vsel %vm71_vm0, %v1501_v54, 0.0 }
 0x3e4   :  { %v1651_v7 = vsel %vm1650_vm4, %v1529_v35, %v1649_v61  ;;  %v1542_v8 = vrot.slane %v1541_v57, 1  ;;  %v1554_v60 = vrot.slane %v1553_v47, 2  ;;  %v1566_v30 = vrot.slane %v1565_v6, 4  ;;  %v1474_v35 = vpop.permute.xlu0 %1473 }
 0x3e5   :  { %v1562_v43 = vadd.f32 %v1561_v19, %v1560_v52  ;;  %v1574_v41 = vadd.f32 %v1573_v3, %v1572_v62  ;;  %v2211_v12 = vpop.f32.mrb[22].mxu1  ;;  %v1653_v39 = vsel %vm1652_vm5, %v1536_v22, %v1651_v7  ;;  %v1550_v15 = vadd.f32 %v1549_v1, %v1548_v45 }
 0x3e6   :  { %v1543_v34 = vadd.f32 %v1542_v8, %v1541_v57  ;;  %v1555_v0 = vadd.f32 %v1554_v60, %v1553_v47  ;;  %v1567_v36 = vadd.f32 %v1566_v30, %v1565_v6  ;;  %v1504_v11 = vmul.f32 %v2211_v12, %v1468_v18  ;;  %v1416_v14 = vpop.f32.mrb[23].mxu1 }
 0x3e7   :  { %v1563_v13 = vrot.slane %v1562_v43, 1  ;;  %v1575_v17 = vrot.slane %v1574_v41, 2  ;;  %v1503_v24 = vmul.f32 %v2982_v20, %v1416_v14 }
 0x3e8   :  { %v1556_v4 = vrot.slane %v1555_v0, 1  ;;  %v1568_v25 = vrot.slane %v1567_v36, 2  ;;  %v1586_v49 = vsel %vm71_vm0, %v1504_v11, 0.0  ;;  %v1655_v53 = vsel %vm1654_vm6, %v1543_v34, %v1653_v39 }
 0x3e9   :  { %v1576_v40 = vadd.f32 %v1575_v17, %v1574_v41  ;;  %v1587_v59 = vrot.slane %v1586_v49, 4  ;;  %v1579_v26 = vsel %vm71_vm0, %v1503_v24, 0.0  ;;  %v1657_v51 = vsel %vm1656_vm7, %v1550_v15, %v1655_v53 }
 0x3ea   :  { %v1557_v27 = vadd.f32 %v1556_v4, %v1555_v0  ;;  %v1569_v28 = vadd.f32 %v1568_v25, %v1567_v36  ;;  %v1580_v2 = vrot.slane %v1579_v26, 4  ;;  %v1564_v9 = vadd.f32 %v1563_v13, %v1562_v43 }
 0x3eb   :  { %v1577_v61 = vrot.slane %v1576_v40, 1  ;;  %v1588_v20 = vadd.f32 %v1587_v59, %v1586_v49  ;;  %v2214_v56 = vpop.f32.mrb[24].mxu1 }
 0x3ec   :  { %v1570_v21 = vrot.slane %v1569_v28, 1  ;;  %v1581_v29 = vadd.f32 %v1580_v2, %v1579_v26  ;;  %v1506_v42 = vmul.f32 %v2214_v56, %v1472_v63  ;;  %v1426_v23 = vpop.f32.mrb[25].mxu1  ;;  %v1659_v31 = vsel %vm1658_vm8, %v1557_v27, %v1657_v51 }
 0x3ed   :  { %v1578_v18 = vadd.f32 %v1577_v61, %v1576_v40  ;;  %v1589_v33 = vrot.slane %v1588_v20, 2  ;;  %v1505_v37 = vmul.f32 %v1470_v10, %v1426_v23  ;;  %v1661_v38 = vsel %vm1660_vm9, %v1564_v9, %v1659_v31  ;;  %v2045_v9 = vld [vmem:[%s3138_s8] ss:$0 sm:$0xff]  ;;  %s2391_s8 = smov [#allocation2]  }
 0x3ee   :  { %v1571_v5 = vadd.f32 %v1570_v21, %v1569_v28  ;;  %v1582_v32 = vrot.slane %v1581_v29, 2  ;;  %v1600_v16 = vsel %vm71_vm0, %v1506_v42, 0.0  ;;  %2226 = vmatprep.mubr.msk.f32.mxu0 %vm71_vm0, %v1661_v38  ;;  %v1824_v42 = vsub.s32 4, %v2647_v46  ;;  %s1965_s19 = sshll.u32 %s2391_s8, 4  ;;  %s1966_s19 = int_to_ptr.vmem [resolvable:$true] %s1965_s19 }
 0x3ef   :  { %v1590_v48 = vadd.f32 %v1589_v33, %v1588_v20  ;;  %v1601_v55 = vrot.slane %v1600_v16, 4  ;;  %v1593_v58 = vsel %vm71_vm0, %v1505_v37, 0.0  ;;  %v1860_v38 = vsub.s32 6, %v2647_v46  ;;  %p2344_p1 = scmp.lt.s32.totalorder %s1966_s19, %s1966_s19 }
 0x3f0   :  { %v1662_v22 = vsel %vm1648_vm3, %v1578_v18, %v1571_v5  ;;  %v1583_v45 = vadd.f32 %v1582_v32, %v1581_v29  ;;  %v1594_v52 = vrot.slane %v1593_v58, 4  ;;  %v2217_v54 = vpop.f32.mrb[26].mxu1  ;;  %v1788_v18 = vsub.s32 2, %v2647_v46 }
 0x3f1   :  { %v1591_v57 = vrot.slane %v1590_v48, 1  ;;  %v1602_v47 = vadd.f32 %v1601_v55, %v1600_v16  ;;  %v1508_v62 = vmul.f32 %v2217_v54, %v1476_v44  ;;  %v1436_v1 = vpop.f32.mrb[27].mxu1  ;;  %v1806_v32 = vsub.s32 3, %v2647_v46 }
 0x3f2   :  { %v1584_v19 = vrot.slane %v1583_v45, 1  ;;  %v1595_v3 = vadd.f32 %v1594_v52, %v1593_v58  ;;  %v1507_v6 = vmul.f32 %v1474_v35, %v1436_v1  ;;  %v1878_v55 = vsub.s32 7, %v2647_v46 }
 0x3f3   :  { %v1603_v7 = vrot.slane %v1602_v47, 2  ;;  %v1614_v8 = vsel %vm71_vm0, %v1508_v62, 0.0  ;;  %v1592_v41 = vadd.f32 %v1591_v57, %v1590_v48  ;;  %v1842_v54 = vsub.s32 5, %v2647_v46 }
 0x3f4   :  { %v1585_v60 = vadd.f32 %v1584_v19, %v1583_v45  ;;  %v1596_v30 = vrot.slane %v1595_v3, 2  ;;  %v1615_v10 = vrot.slane %v1614_v8, 4  ;;  %v1607_v43 = vsel %vm71_vm0, %v1507_v6, 0.0 }
 0x3f5   :  { %v1604_v12 = vadd.f32 %v1603_v7, %v1602_v47  ;;  %v1608_v39 = vrot.slane %v1607_v43, 4 }
 0x3f6   :  { %v1663_v34 = vsel %vm1650_vm4, %v1585_v60, %v1662_v22  ;;  %v1597_v0 = vadd.f32 %v1596_v30, %v1595_v3  ;;  %v1616_v36 = vadd.f32 %v1615_v10, %v1614_v8  ;;  %v1770_v22 = vsub.s32 1, %v2647_v46 }
 0x3f7   :  { %v1605_v11 = vrot.slane %v1604_v12, 1  ;;  %v1664_v14 = vsel %vm1652_vm5, %v1592_v41, %v1663_v34  ;;  %v1609_v15 = vadd.f32 %v1608_v39, %v1607_v43 }
 0x3f8   :  { %v1598_v13 = vrot.slane %v1597_v0, 1  ;;  %v1617_v17 = vrot.slane %v1616_v36, 2 }
 0x3f9   :  { %v1610_v24 = vrot.slane %v1609_v15, 2  ;;  %v1606_v49 = vadd.f32 %v1605_v11, %v1604_v12 }
 0x3fa   :  { %v1599_v4 = vadd.f32 %v1598_v13, %v1597_v0  ;;  %v1618_v25 = vadd.f32 %v1617_v17, %v1616_v36 }
 0x3fb   :  { %v1611_v53 = vadd.f32 %v1610_v24, %v1609_v15 }
 0x3fc   :  { %v1665_v40 = vsel %vm1654_vm6, %v1599_v4, %v1664_v14  ;;  %v1619_v59 = vrot.slane %v1618_v25, 1 }
 0x3fd   :  { %v1612_v26 = vrot.slane %v1611_v53, 1  ;;  %v1666_v27 = vsel %vm1656_vm7, %v1606_v49, %v1665_v40 }
 0x3fe   :  { %v1620_v2 = vadd.f32 %v1619_v59, %v1618_v25 }
 0x3ff   :  { %v1613_v28 = vadd.f32 %v1612_v26, %v1611_v53 }
 0x401   :  { %v1667_v51 = vsel %vm1658_vm8, %v1613_v28, %v1666_v27 }
 0x402   :  { %v1668_v63 = vsel %vm1660_vm9, %v1620_v2, %v1667_v51 }
 0x403   :  { %2227 = vmatmul.mubr.msk.f32.vlgmr.msra.gmra.mrb[22].mxu0 %vm71_vm0, %v1668_v63 }
 0x4d6   :  { %v2228_v61 = vpop.f32.mrb[22].mxu0 }
 0x4d7   :  { %v3017_v20 = vadd.f32 %v2228_v61, %v2045_v9  ;;  %v1739_v56 = vpop.f32.mrb[23].mxu0 }
 0x4d8   :  { %v3019_v21 = vadd.f32 %v2045_v9, %v1739_v56 }
 0x4d9   :  { %1749 = vst.msk [vmem:[#allocation2 + $0x8] sm:$0xff] %vm71_vm0, %v3017_v20  ;;  %v1757_v29 = vrot.slane %v3017_v20, %v2657_v50  ;;  %v1829_v31 = vrot.slane %v3017_v20, %v1824_v42  ;;  %v1793_v37 = vrot.slane %v3017_v20, %v1788_v18  ;;  %v1865_v5 = vrot.slane %v3017_v20, %v1860_v38 }
 0x4da   :  { %1748 = vst.msk [vmem:[#allocation2] sm:$0xff] %vm71_vm0, %v3019_v21  ;;  %v1753_v23 = vrot.slane %v3019_v21, %v2657_v50  ;;  %v1825_v33 = vrot.slane %v3019_v21, %v1824_v42  ;;  %v1789_v50 = vrot.slane %v3019_v21, %v1788_v18  ;;  %v1861_v16 = vrot.slane %v3019_v21, %v1860_v38 }
 0x4db   :  { %1762 = vrot.lane.b32.xlu1 %v1757_v29, %s2388_s23  ;;  %v1811_v48 = vrot.slane %v3017_v20, %v1806_v32  ;;  %v1807_v58 = vrot.slane %v3019_v21, %v1806_v32  ;;  %v1883_v44 = vrot.slane %v3017_v20, %v1878_v55  ;;  %v1879_v45 = vrot.slane %v3019_v21, %v1878_v55 }
 0x4dc   :  { %1760 = vrot.lane.b32.xlu0 %v1753_v23, %s2388_s23  ;;  %v1775_v52 = vrot.slane %v3017_v20, %v1770_v22  ;;  %v1771_v35 = vrot.slane %v3019_v21, %v1770_v22  ;;  %v1847_v57 = vrot.slane %v3017_v20, %v1842_v54  ;;  %v1843_v47 = vrot.slane %v3019_v21, %v1842_v54 }
 0x4df   :  { %1834 = vrot.lane.b32.xlu1 %v1829_v31, %s2388_s23 }
 0x4e0   :  { %1832 = vrot.lane.b32.xlu0 %v1825_v33, %s2388_s23 }
 0x4e3   :  { %1798 = vrot.lane.b32.xlu1 %v1793_v37, %s2388_s23 }
 0x4e4   :  { %1796 = vrot.lane.b32.xlu0 %v1789_v50, %s2388_s23 }
 0x4e7   :  { %1870 = vrot.lane.b32.xlu1 %v1865_v5, %s2388_s23 }
 0x4e8   :  { %1868 = vrot.lane.b32.xlu0 %v1861_v16, %s2388_s23 }
 0x4eb   :  { %1816 = vrot.lane.b32.xlu1 %v1811_v48, %s2388_s23 }
 0x4ec   :  { %1814 = vrot.lane.b32.xlu0 %v1807_v58, %s2388_s23 }
 0x4ef   :  { %1888 = vrot.lane.b32.xlu1 %v1883_v44, %s2388_s23 }
 0x4f0   :  { %1886 = vrot.lane.b32.xlu0 %v1879_v45, %s2388_s23 }
 0x4f3   :  { %1780 = vrot.lane.b32.xlu1 %v1775_v52, %s2388_s23 }
 0x4f4   :  { %1778 = vrot.lane.b32.xlu0 %v1771_v35, %s2388_s23 }
 0x4f7   :  { %1852 = vrot.lane.b32.xlu1 %v1847_v57, %s2388_s23 }
 0x4f8   :  { %1850 = vrot.lane.b32.xlu0 %v1843_v47, %s2388_s23 }
 0x54d   :  { %v1763_v62 = vpop.permute.xlu1 %1762 }
 0x54e   :  { %v1767_v1 = vadd.f32 %v1763_v62, %v3017_v20  ;;  %v1761_v19 = vpop.permute.xlu0 %1760 }
 0x54f   :  { %v1766_v46 = vadd.f32 %v1761_v19, %v3019_v21 }
 0x550   :  { %1898 = vrot.lane.b32.xlu1 %v1767_v1, %s2388_s23 }
 0x551   :  { %v1835_v3 = vpop.permute.xlu1 %1834  ;;  %1896 = vrot.lane.b32.xlu0 %v1766_v46, %s2388_s23 }
 0x552   :  { %v1839_v6 = vadd.f32 %v1835_v3, %v3017_v20  ;;  %v1833_v7 = vpop.permute.xlu0 %1832 }
 0x553   :  { %v1838_v8 = vadd.f32 %v1833_v7, %v3019_v21 }
 0x554   :  { %1922 = vrot.lane.b32.xlu1 %v1839_v6, %s2388_s23 }
 0x555   :  { %v1799_v60 = vpop.permute.xlu1 %1798  ;;  %1920 = vrot.lane.b32.xlu0 %v1838_v8, %s2388_s23  ;;  %s2339_s23 = scalar_lea.vmem %s1966_s19, 256 }
 0x556   :  { %v1803_v30 = vadd.f32 %v1799_v60, %v3017_v20  ;;  %v1797_v10 = vpop.permute.xlu0 %1796  ;;  %p2340_p0 = scmp.ne.s32.totalorder %s1966_s19, %s2339_s23  ;;  %p2345_p2 = scmp.lt.s32.totalorder %s2339_s23, %s2339_s23 }
 0x557   :  { %v1802_v43 = vadd.f32 %v1797_v10, %v3019_v21 }
 0x558   :  { %1906 = vrot.lane.b32.xlu1 %v1803_v30, %s2387_s1  ;;  %p2346_p3 = por %p2345_p2, %p2344_p1 }
 0x559   :  { %v1871_v41 = vpop.permute.xlu1 %1870  ;;  %1904 = vrot.lane.b32.xlu0 %v1802_v43, %s2387_s1 }
 0x55a   :  { %v1875_v12 = vadd.f32 %v1871_v41, %v3017_v20  ;;  %v1869_v39 = vpop.permute.xlu0 %1868  ;;  %p2347_p4 = pnand %p2346_p3, %p2340_p0 }
 0x55b   :  { %v1874_v34 = vadd.f32 %v1869_v39, %v3019_v21 }
 0x55c   :  { %1930 = vrot.lane.b32.xlu1 %v1875_v12, %s2387_s1 }
 0x55d   :  { %v1817_v0 = vpop.permute.xlu1 %1816  ;;  %1928 = vrot.lane.b32.xlu0 %v1874_v34, %s2387_s1 }
 0x55e   :  { %v1821_v36 = vadd.f32 %v1817_v0, %v3017_v20  ;;  %v1815_v11 = vpop.permute.xlu0 %1814 }
 0x55f   :  { %2350 = shalt.err (!%p2347_p4)
}
 0x560   :  { %s2351_s22 = scalar_lea.hbm %s3141_s11, 256 }
 0x561   :  { %p2352_p5 = scmp.ne.s32.totalorder %s3141_s11, %s2351_s22  ;;  %p2355_p6 = scmp.lt.u32.totalorder %s2351_s22, %s3141_s11 }
 0x563   :  { %p2357_p7 = pnand %p2355_p6, %p2352_p5 }
 0x565   :  { %2360 = shalt.err (!%p2357_p7)
}
 0x566   :  { %s2392_s25 = smov 128   ;;  %s2393_s26 = smov 8   ;;  %v1820_v14 = vadd.f32 %v1815_v11, %v3019_v21  ;;  %1914 = vrot.lane.b32.xlu1 %v1821_v36, %s2389_s4  ;;  %v1889_v15 = vpop.permute.xlu1 %1888  ;;  %v1887_v17 = vpop.permute.xlu0 %1886  ;;  %vm1944_vm10 = vcmask 523264   ;;  %vm1947_vm11 = vcmask 785408  }
 0x567   :  { %1971 = dma.vmem_to_hbm [thread:$0]  %s1966_s19, 256, %s3141_s11, [#allocation3], %s2392_s25, %s2392_s25, %s2393_s26   ;;  %v1893_v13 = vadd.f32 %v1889_v15, %v3017_v20  ;;  %v1892_v24 = vadd.f32 %v1887_v17, %v3019_v21 }
 0x568   :  { %1912 = vrot.lane.b32.xlu0 %v1820_v14, %s2389_s4  ;;  %s2394_s11 = smov [#allocation4]  }
 0x56a   :  { %1938 = vrot.lane.b32.xlu1 %v1893_v13, %s2389_s4  ;;  %v1781_v4 = vpop.permute.xlu1 %1780  ;;  %v1779_v25 = vpop.permute.xlu0 %1778 }
 0x56b   :  { %v1785_v63 = vadd.f32 %v1781_v4, %v3017_v20  ;;  %v1784_v61 = vadd.f32 %v1779_v25, %v3019_v21 }
 0x56c   :  { %1936 = vrot.lane.b32.xlu0 %v1892_v24, %s2389_s4  ;;  %s1977_s4 = sshll.u32 %s2394_s11, 4  ;;  %s1978_s4 = int_to_ptr.vmem [resolvable:$true] %s1977_s4 }
 0x56d   :  { %s2361_s28 = scalar_lea.vmem %s1978_s4, 512  ;;  %p2366_p9 = scmp.lt.s32.totalorder %s1978_s4, %s1978_s4 }
 0x56e   :  { %v1853_v49 = vpop.permute.xlu1 %1852  ;;  %v1851_v53 = vpop.permute.xlu0 %1850  ;;  %p2362_p8 = scmp.ne.s32.totalorder %s1978_s4, %s2361_s28  ;;  %p2367_p10 = scmp.lt.s32.totalorder %s2361_s28, %s2361_s28 }
 0x56f   :  { %v1857_v31 = vadd.f32 %v1853_v49, %v3017_v20  ;;  %v1856_v38 = vadd.f32 %v1851_v53, %v3019_v21 }
 0x570   :  { %p2368_p11 = por %p2367_p10, %p2366_p9 }
 0x572   :  { %p2369_p12 = pnand %p2368_p11, %p2362_p8 }
 0x5c2   :  { %v1899_v40 = vpop.permute.xlu1 %1898 }
 0x5c3   :  { %v1897_v59 = vpop.permute.xlu0 %1896  ;;  %v1943_v56 = vsel %vm71_vm0, %v1899_v40, %v1785_v63 }
 0x5c4   :  { %v1942_v29 = vsel %vm71_vm0, %v1897_v59, %v1784_v61 }
 0x5c6   :  { %v1923_v26 = vpop.permute.xlu1 %1922 }
 0x5c7   :  { %v1921_v27 = vpop.permute.xlu0 %1920  ;;  %v1951_v5 = vsel %vm71_vm0, %v1923_v26, %v1857_v31 }
 0x5c8   :  { %v1950_v32 = vsel %vm71_vm0, %v1921_v27, %v1856_v38 }
 0x5ca   :  { %v1907_v28 = vpop.permute.xlu1 %1906 }
 0x5cb   :  { %v1905_v2 = vpop.permute.xlu0 %1904  ;;  %v1946_v42 = vsel %vm1944_vm10, %v1943_v56, %v1907_v28 }
 0x5cc   :  { %v1945_v18 = vsel %vm1944_vm10, %v1942_v29, %v1905_v2 }
 0x5ce   :  { %v1931_v51 = vpop.permute.xlu1 %1930 }
 0x5cf   :  { %v1929_v9 = vpop.permute.xlu0 %1928  ;;  %v1953_v16 = vsel %vm1944_vm10, %v1951_v5, %v1931_v51 }
 0x5d0   :  { %v1952_v48 = vsel %vm1944_vm10, %v1950_v32, %v1929_v9 }
 0x5d8   :  { %v1915_v23 = vpop.permute.xlu1 %1914 }
 0x5d9   :  { %v1949_v33 = vsel %vm1947_vm11, %v1946_v42, %v1915_v23 }
 0x5da   :  { %v1913_v37 = vpop.permute.xlu0 %1912  ;;  %1958 = vst [vmem:[#allocation4 + $0x10] sm:$0xff] %v1949_v33 }
 0x5db   :  { %v1948_v50 = vsel %vm1947_vm11, %v1945_v18, %v1913_v37 }
 0x5dc   :  { %1956 = vst [vmem:[#allocation4] sm:$0xff] %v1948_v50  ;;  %v1939_v20 = vpop.permute.xlu1 %1938 }
 0x5dd   :  { %v1955_v55 = vsel %vm1947_vm11, %v1953_v16, %v1939_v20 }
 0x5de   :  { %v1937_v58 = vpop.permute.xlu0 %1936  ;;  %1959 = vst [vmem:[#allocation4 + $0x18] sm:$0xff] %v1955_v55 }
 0x5df   :  { %v1954_v21 = vsel %vm1947_vm11, %v1952_v48, %v1937_v58 }
 0x5e0   :  { %1957 = vst [vmem:[#allocation4 + $0x8] sm:$0xff] %v1954_v21 }
 0x5e1   :  { %2372 = shalt.err (!%p2369_p12)
}
 0x5e2   :  { %s2373_s30 = scalar_lea.hbm %s3142_s12, 512 }
 0x5e3   :  { %p2374_p13 = scmp.ne.s32.totalorder %s3142_s12, %s2373_s30  ;;  %p2377_p0 = scmp.lt.u32.totalorder %s2373_s30, %s3142_s12 }
 0x5e5   :  { %p2379_p1 = pnand %p2377_p0, %p2374_p13 }
 0x5e7   :  { %2382 = shalt.err (!%p2379_p1)
}
 0x5e8   :  { %s2395_s15 = smov 256   ;;  %s2396_s16 = smov 16  }
 0x5e9   :  { %1983 = dma.vmem_to_hbm [thread:$0]  %s1978_s4, 512, %s3142_s12, [#allocation5], %s2395_s15, %s2395_s15, %s2396_s16  }
 0x5ea   :  { %2383 = dma.done.wait [#allocation3], 256  }
 0x5eb   :  { %2384 = vsyncadd [#allocation3], 4294967040 }
 0x5ec   :  { %2385 = dma.done.wait [#allocation5], 512  }
 0x5ed   :  { %2386 = vsyncadd [#allocation5], 4294966784 }
 0x5ee   :  { %1990 = vsyncpa [#allocation3], 1 }
 0x5ef   :  { %1991 = vsyncpa [#allocation5], 1 }

</bundles_post_ra>
